<compile_context>
chip_gen: v5e
topology: v5e:2x2
jax: 0.10.0
libtpu: 0.0.40
codegen_flags: <defaults>
</compile_context>

<pallas_src>
import math

import jax
import jax.numpy as jnp
from jax.experimental import pallas as pl
from jax.experimental.pallas import tpu as pltpu

# Small, VMEM-friendly synthetic sizes consistent with the module.
BATCH = 2
SEQ = 8
D_MODEL = 32
N_HEADS = 4
D_FF = 64
EPS = 1e-6
NEG_INF = -1e9
MXU_DTYPE = jnp.bfloat16   # MXU operand dtype; all accumulation stays f32.


def _layernorm(x, alpha, bias):
    # Matches the PyTorch LayerNormalization:
    #   mean over last dim; std is the *unbiased* (ddof=1) estimator (torch.std default);
    #   eps added to std (NOT to variance); scalar alpha/bias.
    mean = jnp.mean(x, axis=-1, keepdims=True)
    var = jnp.sum((x - mean) ** 2, axis=-1, keepdims=True) / (x.shape[-1] - 1)
    std = jnp.sqrt(var)
    return alpha * (x - mean) / (std + EPS) + bias


def encoder_block_kernel(x_ref, bias_ref, wqkv_ref, wo_ref,
                         w1_ref, b1_ref, w2_ref, b2_ref, ln_ref, out_ref):
    # One grid step processes a (bb*S, D) row-slab (bb = batch elements per step).
    bb, S, _ = bias_ref.shape              # (bb, S, S) additive mask bias
    BS, D = x_ref.shape                    # BS == bb * S
    H = N_HEADS
    dk = D // H

    x = x_ref[...]                         # (BS, D) float32

    # ---------------- residual connection 0: x + SelfAttn(LN(x)) ----------------
    xn = _layernorm(x, ln_ref[0, 0], ln_ref[0, 1])

    # Fused QKV projection: one bf16 MXU push with N = 3*D (1/sqrt(dk) already folded
    # into the Q columns of wqkv by the wrapper).
    qkv = jnp.dot(xn.astype(MXU_DTYPE), wqkv_ref[...],
                  preferred_element_type=jnp.float32)                    # (BS, 3D) f32
    q = qkv[:, 0 * D:1 * D]
    k = qkv[:, 1 * D:2 * D]
    v = qkv[:, 2 * D:3 * D]

    bias = bias_ref[...]                   # (bb, S, S) precomputed -1e9 mask bias
    wo = wo_ref[...]                       # (D, D) bf16

    # Heads: unrolled loop of leading-batch einsums.  No transposes, no concatenate —
    # the head-concat is absorbed into W_O via per-head row blocks of wo.
    attn = jnp.zeros((BS, D), jnp.float32)
    for h in range(H):
        sl = slice(h * dk, (h + 1) * dk)
        qh = q[:, sl].reshape(bb, S, dk).astype(MXU_DTYPE)   # leading-dim split only
        kh = k[:, sl].reshape(bb, S, dk).astype(MXU_DTYPE)
        vh = v[:, sl].reshape(bb, S, dk).astype(MXU_DTYPE)

        s = jnp.einsum('bqd,bkd->bqk', qh, kh,
                       preferred_element_type=jnp.float32)               # (bb, S, S)
        s = s + bias
        s = s - jnp.max(s, axis=-1, keepdims=True)
        e = jnp.exp(s)
        p = e / jnp.sum(e, axis=-1, keepdims=True)           # exact divide (review)

        ctx = jnp.einsum('bqk,bkd->bqd', p.astype(MXU_DTYPE), vh,
                         preferred_element_type=jnp.float32)             # (bb, S, dk)
        attn = attn + jnp.dot(ctx.reshape(BS, dk).astype(MXU_DTYPE), wo[sl, :],
                              preferred_element_type=jnp.float32)        # (BS, D)

    x1 = x + attn                                                        # dropout = identity

    # ---------------- residual connection 1: x1 + FFN(LN(x1)) -------------------
    x1n = _layernorm(x1, ln_ref[1, 0], ln_ref[1, 1])
    h1 = jnp.dot(x1n.astype(MXU_DTYPE), w1_ref[...],
                 preferred_element_type=jnp.float32) + b1_ref[...]
    h1 = jnp.maximum(h1, 0.0)
    ff = jnp.dot(h1.astype(MXU_DTYPE), w2_ref[...],
                 preferred_element_type=jnp.float32) + b2_ref[...]
    out_ref[...] = x1 + ff


def _multi_tensorcore_chip():
    """True on chips with >1 TensorCore (v7x); per-batch CORE_PARALLEL grid there."""
    try:
        kind = jax.devices()[0].device_kind.lower()
    except Exception:
        return False
    return ("v7" in kind) or ("7x" in kind)


def encoder_block(x, mask, params, *, batch_block=None):
    wq, wk, wv, wo, w1, b1, w2, b2, ln = params
    B, S, D = x.shape
    dk = D // N_HEADS
    assert mask.shape == (B, 1, S, S)

    # v5e/v6e (1 TC): single grid step (whole batch in one slab; per-step overhead
    # dominates at these toy sizes).  v7x (2 TCs): grid=(B,) CORE_PARALLEL so each
    # core takes one batch element.
    multi_tc = _multi_tensorcore_chip()
    if batch_block is None:
        batch_block = 1 if multi_tc else B
    assert B % batch_block == 0
    nb = B // batch_block
    bs_blk = batch_block * S

    # Wrapper-side one-time prep (free):
    #   * fold 1/sqrt(dk) into Wq, fuse QKV weights, pre-cast weights to bf16
    #   * precompute additive mask bias and drop its size-1 head dim
    #   * flatten batch into the matmul M dimension
    wq_scaled = wq * (1.0 / math.sqrt(dk))
    wqkv = jnp.concatenate([wq_scaled, wk, wv], axis=1).astype(MXU_DTYPE)   # (D, 3D)
    wo_c = wo.astype(MXU_DTYPE)
    w1_c = w1.astype(MXU_DTYPE)
    w2_c = w2.astype(MXU_DTYPE)
    bias = jnp.where(mask == 0.0, jnp.float32(NEG_INF),
                     jnp.float32(0.0)).reshape(B, S, S)                    # (B, S, S)
    x2d = x.reshape(B * S, D).astype(jnp.float32)

    if nb == 1:
        sem = ("arbitrary",)
    elif multi_tc:
        sem = (pltpu.CORE_PARALLEL,)       # make sure both TCs actually split the grid
    else:
        sem = ("parallel",)

    def const(shape):
        nd = len(shape)
        return pl.BlockSpec(shape, lambda i, _nd=nd: (0,) * _nd)

    out = pl.pallas_call(
        encoder_block_kernel,
        out_shape=jax.ShapeDtypeStruct((B * S, D), jnp.float32),
        grid_spec=pl.GridSpec(
            grid=(nb,),
            in_specs=[
                pl.BlockSpec((bs_blk, D), lambda i: (i, 0)),               # x rows
                pl.BlockSpec((batch_block, S, S), lambda i: (i, 0, 0)),    # mask bias
                const((D, 3 * D)),                                         # fused Wqkv
                const((D, D)),                                             # Wo
                const((D, D_FF)), const((1, D_FF)),                        # W1, b1
                const((D_FF, D)), const((1, D)),                           # W2, b2
                pl.BlockSpec(memory_space=pltpu.SMEM),                     # ln scalars (2,2)
            ],
            out_specs=pl.BlockSpec((bs_blk, D), lambda i: (i, 0)),
        ),
        compiler_params=pltpu.CompilerParams(
            dimension_semantics=sem,
            vmem_limit_bytes=32 * 1024 * 1024),
    )(x2d, bias, wqkv, wo_c, w1_c, b1, w2_c, b2, ln)
    return out.reshape(B, S, D)


def encoder_block_ref(x, mask, params):
    """Pure-JAX f32 reference mirroring the PyTorch forward exactly."""
    wq, wk, wv, wo, w1, b1, w2, b2, ln = params
    B, S, D = x.shape
    dk = D // N_HEADS

    def lnorm(y, a, b):
        mean = y.mean(-1, keepdims=True)
        std = jnp.sqrt(((y - mean) ** 2).sum(-1, keepdims=True) / (y.shape[-1] - 1))
        return a * (y - mean) / (std + EPS) + b

    xn = lnorm(x, ln[0, 0], ln[0, 1])
    q = (xn @ wq).reshape(B, S, N_HEADS, dk).transpose(0, 2, 1, 3)
    k = (xn @ wk).reshape(B, S, N_HEADS, dk).transpose(0, 2, 1, 3)
    v = (xn @ wv).reshape(B, S, N_HEADS, dk).transpose(0, 2, 1, 3)
    scores = jnp.einsum('bhqd,bhkd->bhqk', q, k) / math.sqrt(dk)
    scores = jnp.where(mask == 0, NEG_INF, scores)
    p = jax.nn.softmax(scores, axis=-1)
    attn = jnp.einsum('bhqk,bhkd->bhqd', p, v).transpose(0, 2, 1, 3).reshape(B, S, D) @ wo
    x1 = x + attn
    x1n = lnorm(x1, ln[1, 0], ln[1, 1])
    ff = jnp.maximum(x1n @ w1 + b1, 0.0) @ w2 + b2
    return x1 + ff


if __name__ == "__main__":
    key = jax.random.PRNGKey(0)
    ks = jax.random.split(key, 10)
    s = 0.1
    wq = s * jax.random.normal(ks[0], (D_MODEL, D_MODEL), jnp.float32)
    wk = s * jax.random.normal(ks[1], (D_MODEL, D_MODEL), jnp.float32)
    wv = s * jax.random.normal(ks[2], (D_MODEL, D_MODEL), jnp.float32)
    wo = s * jax.random.normal(ks[3], (D_MODEL, D_MODEL), jnp.float32)
    w1 = s * jax.random.normal(ks[4], (D_MODEL, D_FF), jnp.float32)
    b1 = s * jax.random.normal(ks[5], (1, D_FF), jnp.float32)
    w2 = s * jax.random.normal(ks[6], (D_FF, D_MODEL), jnp.float32)
    b2 = s * jax.random.normal(ks[7], (1, D_MODEL), jnp.float32)
    # LayerNormalization params: alpha=1, bias=0 for both residual connections.
    ln = jnp.array([[1.0, 0.0], [1.0, 0.0]], dtype=jnp.float32)
    params = (wq, wk, wv, wo, w1, b1, w2, b2, ln)

    x = jax.random.normal(ks[8], (BATCH, SEQ, D_MODEL), jnp.float32)
    # src_mask: mask out the last two key positions for batch element 1.
    mask = jnp.ones((BATCH, 1, SEQ, SEQ), jnp.float32)
    mask = mask.at[1, 0, :, SEQ - 2:].set(0.0)

    out = encoder_block(x, mask, params)
    jax.block_until_ready(out)

    ref = encoder_block_ref(x, mask, params)
    assert out.shape == ref.shape == (BATCH, SEQ, D_MODEL)
    # Tolerance sized for bf16 MXU operands with f32 accumulation (per perf review);
    # the softmax itself is exact (no approx reciprocal).
    max_err = float(jnp.max(jnp.abs(out - ref)))
    assert jnp.allclose(out, ref, atol=2e-2, rtol=2e-2), f"max_err={max_err}"
    print("KERNEL_OK")
</pallas_src>

<mosaic_0001>
module attributes {stable_mosaic.version = 11 : i64} {
  func.func @encoder_block_kernel(%arg0: i32, %arg1: memref<16x32xf32, #tpu.memory_space<vmem>>, %arg2: memref<2x8x8xf32, #tpu.memory_space<vmem>>, %arg3: memref<32x96xbf16, #tpu.memory_space<vmem>>, %arg4: memref<32x32xbf16, #tpu.memory_space<vmem>>, %arg5: memref<32x64xbf16, #tpu.memory_space<vmem>>, %arg6: memref<1x64xf32, #tpu.memory_space<vmem>>, %arg7: memref<64x32xbf16, #tpu.memory_space<vmem>>, %arg8: memref<1x32xf32, #tpu.memory_space<vmem>>, %arg9: memref<2x2xf32, #tpu.memory_space<smem>>, %arg10: memref<16x32xf32, #tpu.memory_space<vmem>>) attributes {dimension_semantics = [#tpu.dimension_semantics<arbitrary>], iteration_bounds = array<i64: 1>, scalar_prefetch = 0 : i64, scratch_operands = 0 : i64, tpu.core_type = #tpu.core_type<tc>, window_params = [{transform_indices = @transform_0, window_bounds = array<i64: 16, 32>}, {transform_indices = @transform_1, window_bounds = array<i64: 2, 8, 8>}, {pipeline_mode = #tpu.pipeline_mode<synchronous>, transform_indices = @transform_2, window_bounds = array<i64: 32, 96>}, {pipeline_mode = #tpu.pipeline_mode<synchronous>, transform_indices = @transform_3, window_bounds = array<i64: 32, 32>}, {pipeline_mode = #tpu.pipeline_mode<synchronous>, transform_indices = @transform_4, window_bounds = array<i64: 32, 64>}, {pipeline_mode = #tpu.pipeline_mode<synchronous>, transform_indices = @transform_5, window_bounds = array<i64: 1, 64>}, {pipeline_mode = #tpu.pipeline_mode<synchronous>, transform_indices = @transform_6, window_bounds = array<i64: 64, 32>}, {pipeline_mode = #tpu.pipeline_mode<synchronous>, transform_indices = @transform_7, window_bounds = array<i64: 1, 32>}, {transform_indices = @transform_8, window_bounds = array<i64: 2, 2>}, {transform_indices = @transform_9, window_bounds = array<i64: 16, 32>}]} {
    %c0 = arith.constant 0 : index
    %c0_0 = arith.constant 0 : index
    %0 = vector.load %arg1[%c0, %c0_0] : memref<16x32xf32, #tpu.memory_space<vmem>>, vector<16x32xf32>
    %c0_1 = arith.constant 0 : index
    %c0_2 = arith.constant 0 : index
    %1 = memref.load %arg9[%c0_1, %c0_2] : memref<2x2xf32, #tpu.memory_space<smem>>
    %c0_3 = arith.constant 0 : index
    %c1 = arith.constant 1 : index
    %2 = memref.load %arg9[%c0_3, %c1] : memref<2x2xf32, #tpu.memory_space<smem>>
    %cst = arith.constant dense<0.000000e+00> : vector<16xf32>
    %3 = vector.multi_reduction <add>, %0, %cst [1] : vector<16x32xf32> to vector<16xf32>
    %4 = vector.shape_cast %3 : vector<16xf32> to vector<16x1xf32>
    %cst_4 = arith.constant 3.200000e+01 : f32
    %5 = vector.broadcast %cst_4 : f32 to vector<16x1xf32>
    %6 = arith.divf %4, %5 : vector<16x1xf32>
    %7 = vector.broadcast %6 : vector<16x1xf32> to vector<16x32xf32>
    %8 = arith.subf %0, %7 : vector<16x32xf32>
    %9 = arith.mulf %8, %8 : vector<16x32xf32>
    %cst_5 = arith.constant dense<0.000000e+00> : vector<16xf32>
    %10 = vector.multi_reduction <add>, %9, %cst_5 [1] : vector<16x32xf32> to vector<16xf32>
    %11 = vector.shape_cast %10 : vector<16xf32> to vector<16x1xf32>
    %cst_6 = arith.constant 3.100000e+01 : f32
    %12 = vector.broadcast %cst_6 : f32 to vector<16x1xf32>
    %13 = arith.divf %11, %12 : vector<16x1xf32>
    %14 = math.sqrt %13 : vector<16x1xf32>
    %15 = vector.broadcast %6 : vector<16x1xf32> to vector<16x32xf32>
    %16 = arith.subf %0, %15 : vector<16x32xf32>
    %17 = vector.broadcast %1 : f32 to vector<16x32xf32>
    %18 = arith.mulf %17, %16 : vector<16x32xf32>
    %cst_7 = arith.constant 9.99999997E-7 : f32
    %19 = vector.broadcast %cst_7 : f32 to vector<16x1xf32>
    %20 = arith.addf %14, %19 : vector<16x1xf32>
    %21 = vector.broadcast %20 : vector<16x1xf32> to vector<16x32xf32>
    %22 = arith.divf %18, %21 : vector<16x32xf32>
    %23 = vector.broadcast %2 : f32 to vector<16x32xf32>
    %24 = arith.addf %22, %23 : vector<16x32xf32>
    %25 = arith.truncf %24 : vector<16x32xf32> to vector<16x32xbf16>
    %c0_8 = arith.constant 0 : index
    %c0_9 = arith.constant 0 : index
    %26 = vector.load %arg3[%c0_8, %c0_9] : memref<32x96xbf16, #tpu.memory_space<vmem>>, vector<32x96xbf16>
    %cst_10 = arith.constant dense<0.000000e+00> : vector<16x96xf32>
    %27 = tpu.matmul %25, %26, %cst_10 {dimension_numbers = #tpu.dot_dimension_numbers<[1], [0], [0], [1], [0, 0, 1, 1], [], []>} : vector<16x32xbf16>, vector<32x96xbf16>, vector<16x96xf32> -> vector<16x96xf32>
    %28 = vector.extract_strided_slice %27 {offsets = [0, 0], sizes = [16, 32], strides = [1, 1]} : vector<16x96xf32> to vector<16x32xf32>
    %29 = vector.extract_strided_slice %27 {offsets = [0, 32], sizes = [16, 32], strides = [1, 1]} : vector<16x96xf32> to vector<16x32xf32>
    %30 = vector.extract_strided_slice %27 {offsets = [0, 64], sizes = [16, 32], strides = [1, 1]} : vector<16x96xf32> to vector<16x32xf32>
    %c0_11 = arith.constant 0 : index
    %c0_12 = arith.constant 0 : index
    %c0_13 = arith.constant 0 : index
    %31 = vector.load %arg2[%c0_11, %c0_12, %c0_13] : memref<2x8x8xf32, #tpu.memory_space<vmem>>, vector<2x8x8xf32>
    %c0_14 = arith.constant 0 : index
    %c0_15 = arith.constant 0 : index
    %32 = vector.load %arg4[%c0_14, %c0_15] : memref<32x32xbf16, #tpu.memory_space<vmem>>, vector<32x32xbf16>
    %cst_16 = arith.constant 0.000000e+00 : f32
    %33 = vector.broadcast %cst_16 : f32 to vector<16x32xf32>
    %34 = vector.extract_strided_slice %28 {offsets = [0, 0], sizes = [16, 8], strides = [1, 1]} : vector<16x32xf32> to vector<16x8xf32>
    %35 = vector.shape_cast %34 : vector<16x8xf32> to vector<2x8x8xf32>
    %36 = arith.truncf %35 : vector<2x8x8xf32> to vector<2x8x8xbf16>
    %37 = vector.extract_strided_slice %29 {offsets = [0, 0], sizes = [16, 8], strides = [1, 1]} : vector<16x32xf32> to vector<16x8xf32>
    %38 = vector.shape_cast %37 : vector<16x8xf32> to vector<2x8x8xf32>
    %39 = arith.truncf %38 : vector<2x8x8xf32> to vector<2x8x8xbf16>
    %40 = vector.extract_strided_slice %30 {offsets = [0, 0], sizes = [16, 8], strides = [1, 1]} : vector<16x32xf32> to vector<16x8xf32>
    %41 = vector.shape_cast %40 : vector<16x8xf32> to vector<2x8x8xf32>
    %42 = arith.truncf %41 : vector<2x8x8xf32> to vector<2x8x8xbf16>
    "tpu.trace_start"() <{level = 10 : i32, message = "bqd,bkd->bqk"}> : () -> ()
    %cst_17 = arith.constant dense<0.000000e+00> : vector<2x8x8xf32>
    %43 = tpu.matmul %36, %39, %cst_17 {dimension_numbers = #tpu.dot_dimension_numbers<[2], [2], [1], [1], [0, 0, 0, 1, 1, 1], [0], [0]>} : vector<2x8x8xbf16>, vector<2x8x8xbf16>, vector<2x8x8xf32> -> vector<2x8x8xf32>
    "tpu.trace_stop"() : () -> ()
    %44 = arith.addf %43, %31 : vector<2x8x8xf32>
    %cst_18 = arith.constant dense<0xFF800000> : vector<2x8xf32>
    %45 = vector.multi_reduction <maximumf>, %44, %cst_18 [2] : vector<2x8x8xf32> to vector<2x8xf32>
    %46 = vector.shape_cast %45 : vector<2x8xf32> to vector<2x8x1xf32>
    %47 = vector.broadcast %46 : vector<2x8x1xf32> to vector<2x8x8xf32>
    %48 = arith.subf %44, %47 : vector<2x8x8xf32>
    %49 = math.exp %48 : vector<2x8x8xf32>
    %cst_19 = arith.constant dense<0.000000e+00> : vector<2x8xf32>
    %50 = vector.multi_reduction <add>, %49, %cst_19 [2] : vector<2x8x8xf32> to vector<2x8xf32>
    %51 = vector.shape_cast %50 : vector<2x8xf32> to vector<2x8x1xf32>
    %52 = vector.broadcast %51 : vector<2x8x1xf32> to vector<2x8x8xf32>
    %53 = arith.divf %49, %52 : vector<2x8x8xf32>
    %54 = arith.truncf %53 : vector<2x8x8xf32> to vector<2x8x8xbf16>
    "tpu.trace_start"() <{level = 10 : i32, message = "bqk,bkd->bqd"}> : () -> ()
    %cst_20 = arith.constant dense<0.000000e+00> : vector<2x8x8xf32>
    %55 = tpu.matmul %54, %42, %cst_20 {dimension_numbers = #tpu.dot_dimension_numbers<[2], [1], [1], [2], [0, 0, 0, 1, 1, 2], [0], [0]>} : vector<2x8x8xbf16>, vector<2x8x8xbf16>, vector<2x8x8xf32> -> vector<2x8x8xf32>
    "tpu.trace_stop"() : () -> ()
    %56 = vector.shape_cast %55 : vector<2x8x8xf32> to vector<16x8xf32>
    %57 = arith.truncf %56 : vector<16x8xf32> to vector<16x8xbf16>
    %58 = vector.extract_strided_slice %32 {offsets = [0, 0], sizes = [8, 32], strides = [1, 1]} : vector<32x32xbf16> to vector<8x32xbf16>
    %cst_21 = arith.constant dense<0.000000e+00> : vector<16x32xf32>
    %59 = tpu.matmul %57, %58, %cst_21 {dimension_numbers = #tpu.dot_dimension_numbers<[1], [0], [0], [1], [0, 0, 1, 1], [], []>} : vector<16x8xbf16>, vector<8x32xbf16>, vector<16x32xf32> -> vector<16x32xf32>
    %60 = arith.addf %33, %59 : vector<16x32xf32>
    %61 = vector.extract_strided_slice %28 {offsets = [0, 8], sizes = [16, 8], strides = [1, 1]} : vector<16x32xf32> to vector<16x8xf32>
    %62 = vector.shape_cast %61 : vector<16x8xf32> to vector<2x8x8xf32>
    %63 = arith.truncf %62 : vector<2x8x8xf32> to vector<2x8x8xbf16>
    %64 = vector.extract_strided_slice %29 {offsets = [0, 8], sizes = [16, 8], strides = [1, 1]} : vector<16x32xf32> to vector<16x8xf32>
    %65 = vector.shape_cast %64 : vector<16x8xf32> to vector<2x8x8xf32>
    %66 = arith.truncf %65 : vector<2x8x8xf32> to vector<2x8x8xbf16>
    %67 = vector.extract_strided_slice %30 {offsets = [0, 8], sizes = [16, 8], strides = [1, 1]} : vector<16x32xf32> to vector<16x8xf32>
    %68 = vector.shape_cast %67 : vector<16x8xf32> to vector<2x8x8xf32>
    %69 = arith.truncf %68 : vector<2x8x8xf32> to vector<2x8x8xbf16>
    "tpu.trace_start"() <{level = 10 : i32, message = "bqd,bkd->bqk"}> : () -> ()
    %cst_22 = arith.constant dense<0.000000e+00> : vector<2x8x8xf32>
    %70 = tpu.matmul %63, %66, %cst_22 {dimension_numbers = #tpu.dot_dimension_numbers<[2], [2], [1], [1], [0, 0, 0, 1, 1, 1], [0], [0]>} : vector<2x8x8xbf16>, vector<2x8x8xbf16>, vector<2x8x8xf32> -> vector<2x8x8xf32>
    "tpu.trace_stop"() : () -> ()
    %71 = arith.addf %70, %31 : vector<2x8x8xf32>
    %cst_23 = arith.constant dense<0xFF800000> : vector<2x8xf32>
    %72 = vector.multi_reduction <maximumf>, %71, %cst_23 [2] : vector<2x8x8xf32> to vector<2x8xf32>
    %73 = vector.shape_cast %72 : vector<2x8xf32> to vector<2x8x1xf32>
    %74 = vector.broadcast %73 : vector<2x8x1xf32> to vector<2x8x8xf32>
    %75 = arith.subf %71, %74 : vector<2x8x8xf32>
    %76 = math.exp %75 : vector<2x8x8xf32>
    %cst_24 = arith.constant dense<0.000000e+00> : vector<2x8xf32>
    %77 = vector.multi_reduction <add>, %76, %cst_24 [2] : vector<2x8x8xf32> to vector<2x8xf32>
    %78 = vector.shape_cast %77 : vector<2x8xf32> to vector<2x8x1xf32>
    %79 = vector.broadcast %78 : vector<2x8x1xf32> to vector<2x8x8xf32>
    %80 = arith.divf %76, %79 : vector<2x8x8xf32>
    %81 = arith.truncf %80 : vector<2x8x8xf32> to vector<2x8x8xbf16>
    "tpu.trace_start"() <{level = 10 : i32, message = "bqk,bkd->bqd"}> : () -> ()
    %cst_25 = arith.constant dense<0.000000e+00> : vector<2x8x8xf32>
    %82 = tpu.matmul %81, %69, %cst_25 {dimension_numbers = #tpu.dot_dimension_numbers<[2], [1], [1], [2], [0, 0, 0, 1, 1, 2], [0], [0]>} : vector<2x8x8xbf16>, vector<2x8x8xbf16>, vector<2x8x8xf32> -> vector<2x8x8xf32>
    "tpu.trace_stop"() : () -> ()
    %83 = vector.shape_cast %82 : vector<2x8x8xf32> to vector<16x8xf32>
    %84 = arith.truncf %83 : vector<16x8xf32> to vector<16x8xbf16>
    %85 = vector.extract_strided_slice %32 {offsets = [8, 0], sizes = [8, 32], strides = [1, 1]} : vector<32x32xbf16> to vector<8x32xbf16>
    %cst_26 = arith.constant dense<0.000000e+00> : vector<16x32xf32>
    %86 = tpu.matmul %84, %85, %cst_26 {dimension_numbers = #tpu.dot_dimension_numbers<[1], [0], [0], [1], [0, 0, 1, 1], [], []>} : vector<16x8xbf16>, vector<8x32xbf16>, vector<16x32xf32> -> vector<16x32xf32>
    %87 = arith.addf %60, %86 : vector<16x32xf32>
    %88 = vector.extract_strided_slice %28 {offsets = [0, 16], sizes = [16, 8], strides = [1, 1]} : vector<16x32xf32> to vector<16x8xf32>
    %89 = vector.shape_cast %88 : vector<16x8xf32> to vector<2x8x8xf32>
    %90 = arith.truncf %89 : vector<2x8x8xf32> to vector<2x8x8xbf16>
    %91 = vector.extract_strided_slice %29 {offsets = [0, 16], sizes = [16, 8], strides = [1, 1]} : vector<16x32xf32> to vector<16x8xf32>
    %92 = vector.shape_cast %91 : vector<16x8xf32> to vector<2x8x8xf32>
    %93 = arith.truncf %92 : vector<2x8x8xf32> to vector<2x8x8xbf16>
    %94 = vector.extract_strided_slice %30 {offsets = [0, 16], sizes = [16, 8], strides = [1, 1]} : vector<16x32xf32> to vector<16x8xf32>
    %95 = vector.shape_cast %94 : vector<16x8xf32> to vector<2x8x8xf32>
    %96 = arith.truncf %95 : vector<2x8x8xf32> to vector<2x8x8xbf16>
    "tpu.trace_start"() <{level = 10 : i32, message = "bqd,bkd->bqk"}> : () -> ()
    %cst_27 = arith.constant dense<0.000000e+00> : vector<2x8x8xf32>
    %97 = tpu.matmul %90, %93, %cst_27 {dimension_numbers = #tpu.dot_dimension_numbers<[2], [2], [1], [1], [0, 0, 0, 1, 1, 1], [0], [0]>} : vector<2x8x8xbf16>, vector<2x8x8xbf16>, vector<2x8x8xf32> -> vector<2x8x8xf32>
    "tpu.trace_stop"() : () -> ()
    %98 = arith.addf %97, %31 : vector<2x8x8xf32>
    %cst_28 = arith.constant dense<0xFF800000> : vector<2x8xf32>
    %99 = vector.multi_reduction <maximumf>, %98, %cst_28 [2] : vector<2x8x8xf32> to vector<2x8xf32>
    %100 = vector.shape_cast %99 : vector<2x8xf32> to vector<2x8x1xf32>
    %101 = vector.broadcast %100 : vector<2x8x1xf32> to vector<2x8x8xf32>
    %102 = arith.subf %98, %101 : vector<2x8x8xf32>
    %103 = math.exp %102 : vector<2x8x8xf32>
    %cst_29 = arith.constant dense<0.000000e+00> : vector<2x8xf32>
    %104 = vector.multi_reduction <add>, %103, %cst_29 [2] : vector<2x8x8xf32> to vector<2x8xf32>
    %105 = vector.shape_cast %104 : vector<2x8xf32> to vector<2x8x1xf32>
    %106 = vector.broadcast %105 : vector<2x8x1xf32> to vector<2x8x8xf32>
    %107 = arith.divf %103, %106 : vector<2x8x8xf32>
    %108 = arith.truncf %107 : vector<2x8x8xf32> to vector<2x8x8xbf16>
    "tpu.trace_start"() <{level = 10 : i32, message = "bqk,bkd->bqd"}> : () -> ()
    %cst_30 = arith.constant dense<0.000000e+00> : vector<2x8x8xf32>
    %109 = tpu.matmul %108, %96, %cst_30 {dimension_numbers = #tpu.dot_dimension_numbers<[2], [1], [1], [2], [0, 0, 0, 1, 1, 2], [0], [0]>} : vector<2x8x8xbf16>, vector<2x8x8xbf16>, vector<2x8x8xf32> -> vector<2x8x8xf32>
    "tpu.trace_stop"() : () -> ()
    %110 = vector.shape_cast %109 : vector<2x8x8xf32> to vector<16x8xf32>
    %111 = arith.truncf %110 : vector<16x8xf32> to vector<16x8xbf16>
    %112 = vector.extract_strided_slice %32 {offsets = [16, 0], sizes = [8, 32], strides = [1, 1]} : vector<32x32xbf16> to vector<8x32xbf16>
    %cst_31 = arith.constant dense<0.000000e+00> : vector<16x32xf32>
    %113 = tpu.matmul %111, %112, %cst_31 {dimension_numbers = #tpu.dot_dimension_numbers<[1], [0], [0], [1], [0, 0, 1, 1], [], []>} : vector<16x8xbf16>, vector<8x32xbf16>, vector<16x32xf32> -> vector<16x32xf32>
    %114 = arith.addf %87, %113 : vector<16x32xf32>
    %115 = vector.extract_strided_slice %28 {offsets = [0, 24], sizes = [16, 8], strides = [1, 1]} : vector<16x32xf32> to vector<16x8xf32>
    %116 = vector.shape_cast %115 : vector<16x8xf32> to vector<2x8x8xf32>
    %117 = arith.truncf %116 : vector<2x8x8xf32> to vector<2x8x8xbf16>
    %118 = vector.extract_strided_slice %29 {offsets = [0, 24], sizes = [16, 8], strides = [1, 1]} : vector<16x32xf32> to vector<16x8xf32>
    %119 = vector.shape_cast %118 : vector<16x8xf32> to vector<2x8x8xf32>
    %120 = arith.truncf %119 : vector<2x8x8xf32> to vector<2x8x8xbf16>
    %121 = vector.extract_strided_slice %30 {offsets = [0, 24], sizes = [16, 8], strides = [1, 1]} : vector<16x32xf32> to vector<16x8xf32>
    %122 = vector.shape_cast %121 : vector<16x8xf32> to vector<2x8x8xf32>
    %123 = arith.truncf %122 : vector<2x8x8xf32> to vector<2x8x8xbf16>
    "tpu.trace_start"() <{level = 10 : i32, message = "bqd,bkd->bqk"}> : () -> ()
    %cst_32 = arith.constant dense<0.000000e+00> : vector<2x8x8xf32>
    %124 = tpu.matmul %117, %120, %cst_32 {dimension_numbers = #tpu.dot_dimension_numbers<[2], [2], [1], [1], [0, 0, 0, 1, 1, 1], [0], [0]>} : vector<2x8x8xbf16>, vector<2x8x8xbf16>, vector<2x8x8xf32> -> vector<2x8x8xf32>
    "tpu.trace_stop"() : () -> ()
    %125 = arith.addf %124, %31 : vector<2x8x8xf32>
    %cst_33 = arith.constant dense<0xFF800000> : vector<2x8xf32>
    %126 = vector.multi_reduction <maximumf>, %125, %cst_33 [2] : vector<2x8x8xf32> to vector<2x8xf32>
    %127 = vector.shape_cast %126 : vector<2x8xf32> to vector<2x8x1xf32>
    %128 = vector.broadcast %127 : vector<2x8x1xf32> to vector<2x8x8xf32>
    %129 = arith.subf %125, %128 : vector<2x8x8xf32>
    %130 = math.exp %129 : vector<2x8x8xf32>
    %cst_34 = arith.constant dense<0.000000e+00> : vector<2x8xf32>
    %131 = vector.multi_reduction <add>, %130, %cst_34 [2] : vector<2x8x8xf32> to vector<2x8xf32>
    %132 = vector.shape_cast %131 : vector<2x8xf32> to vector<2x8x1xf32>
    %133 = vector.broadcast %132 : vector<2x8x1xf32> to vector<2x8x8xf32>
    %134 = arith.divf %130, %133 : vector<2x8x8xf32>
    %135 = arith.truncf %134 : vector<2x8x8xf32> to vector<2x8x8xbf16>
    "tpu.trace_start"() <{level = 10 : i32, message = "bqk,bkd->bqd"}> : () -> ()
    %cst_35 = arith.constant dense<0.000000e+00> : vector<2x8x8xf32>
    %136 = tpu.matmul %135, %123, %cst_35 {dimension_numbers = #tpu.dot_dimension_numbers<[2], [1], [1], [2], [0, 0, 0, 1, 1, 2], [0], [0]>} : vector<2x8x8xbf16>, vector<2x8x8xbf16>, vector<2x8x8xf32> -> vector<2x8x8xf32>
    "tpu.trace_stop"() : () -> ()
    %137 = vector.shape_cast %136 : vector<2x8x8xf32> to vector<16x8xf32>
    %138 = arith.truncf %137 : vector<16x8xf32> to vector<16x8xbf16>
    %139 = vector.extract_strided_slice %32 {offsets = [24, 0], sizes = [8, 32], strides = [1, 1]} : vector<32x32xbf16> to vector<8x32xbf16>
    %cst_36 = arith.constant dense<0.000000e+00> : vector<16x32xf32>
    %140 = tpu.matmul %138, %139, %cst_36 {dimension_numbers = #tpu.dot_dimension_numbers<[1], [0], [0], [1], [0, 0, 1, 1], [], []>} : vector<16x8xbf16>, vector<8x32xbf16>, vector<16x32xf32> -> vector<16x32xf32>
    %141 = arith.addf %114, %140 : vector<16x32xf32>
    %142 = arith.addf %0, %141 : vector<16x32xf32>
    %c1_37 = arith.constant 1 : index
    %c0_38 = arith.constant 0 : index
    %143 = memref.load %arg9[%c1_37, %c0_38] : memref<2x2xf32, #tpu.memory_space<smem>>
    %c1_39 = arith.constant 1 : index
    %c1_40 = arith.constant 1 : index
    %144 = memref.load %arg9[%c1_39, %c1_40] : memref<2x2xf32, #tpu.memory_space<smem>>
    %cst_41 = arith.constant dense<0.000000e+00> : vector<16xf32>
    %145 = vector.multi_reduction <add>, %142, %cst_41 [1] : vector<16x32xf32> to vector<16xf32>
    %146 = vector.shape_cast %145 : vector<16xf32> to vector<16x1xf32>
    %cst_42 = arith.constant 3.200000e+01 : f32
    %147 = vector.broadcast %cst_42 : f32 to vector<16x1xf32>
    %148 = arith.divf %146, %147 : vector<16x1xf32>
    %149 = vector.broadcast %148 : vector<16x1xf32> to vector<16x32xf32>
    %150 = arith.subf %142, %149 : vector<16x32xf32>
    %151 = arith.mulf %150, %150 : vector<16x32xf32>
    %cst_43 = arith.constant dense<0.000000e+00> : vector<16xf32>
    %152 = vector.multi_reduction <add>, %151, %cst_43 [1] : vector<16x32xf32> to vector<16xf32>
    %153 = vector.shape_cast %152 : vector<16xf32> to vector<16x1xf32>
    %cst_44 = arith.constant 3.100000e+01 : f32
    %154 = vector.broadcast %cst_44 : f32 to vector<16x1xf32>
    %155 = arith.divf %153, %154 : vector<16x1xf32>
    %156 = math.sqrt %155 : vector<16x1xf32>
    %157 = vector.broadcast %148 : vector<16x1xf32> to vector<16x32xf32>
    %158 = arith.subf %142, %157 : vector<16x32xf32>
    %159 = vector.broadcast %143 : f32 to vector<16x32xf32>
    %160 = arith.mulf %159, %158 : vector<16x32xf32>
    %cst_45 = arith.constant 9.99999997E-7 : f32
    %161 = vector.broadcast %cst_45 : f32 to vector<16x1xf32>
    %162 = arith.addf %156, %161 : vector<16x1xf32>
    %163 = vector.broadcast %162 : vector<16x1xf32> to vector<16x32xf32>
    %164 = arith.divf %160, %163 : vector<16x32xf32>
    %165 = vector.broadcast %144 : f32 to vector<16x32xf32>
    %166 = arith.addf %164, %165 : vector<16x32xf32>
    %167 = arith.truncf %166 : vector<16x32xf32> to vector<16x32xbf16>
    %c0_46 = arith.constant 0 : index
    %c0_47 = arith.constant 0 : index
    %168 = vector.load %arg5[%c0_46, %c0_47] : memref<32x64xbf16, #tpu.memory_space<vmem>>, vector<32x64xbf16>
    %cst_48 = arith.constant dense<0.000000e+00> : vector<16x64xf32>
    %169 = tpu.matmul %167, %168, %cst_48 {dimension_numbers = #tpu.dot_dimension_numbers<[1], [0], [0], [1], [0, 0, 1, 1], [], []>} : vector<16x32xbf16>, vector<32x64xbf16>, vector<16x64xf32> -> vector<16x64xf32>
    %c0_49 = arith.constant 0 : index
    %c0_50 = arith.constant 0 : index
    %170 = vector.load %arg6[%c0_49, %c0_50] : memref<1x64xf32, #tpu.memory_space<vmem>>, vector<1x64xf32>
    %171 = vector.broadcast %170 : vector<1x64xf32> to vector<16x64xf32>
    %172 = arith.addf %169, %171 : vector<16x64xf32>
    %cst_51 = arith.constant 0.000000e+00 : f32
    %173 = vector.broadcast %cst_51 : f32 to vector<16x64xf32>
    %174 = arith.maximumf %172, %173 : vector<16x64xf32>
    %175 = arith.truncf %174 : vector<16x64xf32> to vector<16x64xbf16>
    %c0_52 = arith.constant 0 : index
    %c0_53 = arith.constant 0 : index
    %176 = vector.load %arg7[%c0_52, %c0_53] : memref<64x32xbf16, #tpu.memory_space<vmem>>, vector<64x32xbf16>
    %cst_54 = arith.constant dense<0.000000e+00> : vector<16x32xf32>
    %177 = tpu.matmul %175, %176, %cst_54 {dimension_numbers = #tpu.dot_dimension_numbers<[1], [0], [0], [1], [0, 0, 1, 1], [], []>} : vector<16x64xbf16>, vector<64x32xbf16>, vector<16x32xf32> -> vector<16x32xf32>
    %c0_55 = arith.constant 0 : index
    %c0_56 = arith.constant 0 : index
    %178 = vector.load %arg8[%c0_55, %c0_56] : memref<1x32xf32, #tpu.memory_space<vmem>>, vector<1x32xf32>
    %179 = vector.broadcast %178 : vector<1x32xf32> to vector<16x32xf32>
    %180 = arith.addf %177, %179 : vector<16x32xf32>
    %181 = arith.addf %142, %180 : vector<16x32xf32>
    %c0_57 = arith.constant 0 : index
    %c0_58 = arith.constant 0 : index
    %182 = vector.load %arg10[%c0_57, %c0_58] : memref<16x32xf32, #tpu.memory_space<vmem>>, vector<16x32xf32>
    tpu.vector_store %arg10[%c0_57, %c0_58], %181 {strides = array<i32>} : memref<16x32xf32, #tpu.memory_space<vmem>>, vector<16x32xf32>,
    return
  }
  func.func @transform_0(%arg0: i32) -> (i32, i32) {
    %c0_i32 = arith.constant 0 : i32
    %c0_i32_0 = arith.constant 0 : i32
    return %arg0, %c0_i32 : i32, i32
  }
  func.func @transform_1(%arg0: i32) -> (i32, i32, i32) {
    %c0_i32 = arith.constant 0 : i32
    %c0_i32_0 = arith.constant 0 : i32
    %c0_i32_1 = arith.constant 0 : i32
    return %arg0, %c0_i32, %c0_i32_0 : i32, i32, i32
  }
  func.func @transform_2(%arg0: i32) -> (i32, i32) {
    %c0_i32 = arith.constant 0 : i32
    %c0_i32_0 = arith.constant 0 : i32
    %c0_i32_1 = arith.constant 0 : i32
    return %c0_i32, %c0_i32_0 : i32, i32
  }
  func.func @transform_3(%arg0: i32) -> (i32, i32) {
    %c0_i32 = arith.constant 0 : i32
    %c0_i32_0 = arith.constant 0 : i32
    %c0_i32_1 = arith.constant 0 : i32
    return %c0_i32, %c0_i32_0 : i32, i32
  }
  func.func @transform_4(%arg0: i32) -> (i32, i32) {
    %c0_i32 = arith.constant 0 : i32
    %c0_i32_0 = arith.constant 0 : i32
    %c0_i32_1 = arith.constant 0 : i32
    return %c0_i32, %c0_i32_0 : i32, i32
  }
  func.func @transform_5(%arg0: i32) -> (i32, i32) {
    %c0_i32 = arith.constant 0 : i32
    %c0_i32_0 = arith.constant 0 : i32
    %c0_i32_1 = arith.constant 0 : i32
    return %c0_i32, %c0_i32_0 : i32, i32
  }
  func.func @transform_6(%arg0: i32) -> (i32, i32) {
    %c0_i32 = arith.constant 0 : i32
    %c0_i32_0 = arith.constant 0 : i32
    %c0_i32_1 = arith.constant 0 : i32
    return %c0_i32, %c0_i32_0 : i32, i32
  }
  func.func @transform_7(%arg0: i32) -> (i32, i32) {
    %c0_i32 = arith.constant 0 : i32
    %c0_i32_0 = arith.constant 0 : i32
    %c0_i32_1 = arith.constant 0 : i32
    return %c0_i32, %c0_i32_0 : i32, i32
  }
  func.func @transform_8(%arg0: i32) -> (i32, i32) {
    %c0_i32 = arith.constant 0 : i32
    %c0_i32_0 = arith.constant 0 : i32
    %c0_i32_1 = arith.constant 0 : i32
    return %c0_i32, %c0_i32_0 : i32, i32
  }
  func.func @transform_9(%arg0: i32) -> (i32, i32) {
    %c0_i32 = arith.constant 0 : i32
    %c0_i32_0 = arith.constant 0 : i32
    return %arg0, %c0_i32 : i32, i32
  }
}

</mosaic_0001>

<bundles_post_ra>
// kernel: tpu_custom_call.1
= control target key start
LH: loop header
LB: loop body
LE: loop exit
PB: predicated region body
PF: predicated region fallthrough
CT: control target
= control target key end

     0   :  { %14 = vsyncpa [#allocation3], 0  ;;  %s1615_s0 = inlined_call_operand.vmem [shape: f32[16,32], index: 0, kind: input, shape index: {}]   ;;  %s1616_s1 = inlined_call_operand.vmem [shape: f32[2,8,8], index: 1, kind: input, shape index: {}]   ;;  %s1617_s2 = inlined_call_operand.vmem [shape: bf16[32,96], index: 2, kind: input, shape index: {}]   ;;  %s1618_s3 = inlined_call_operand.hbm [shape: bf16[32,32], index: 3, kind: input, shape index: {}]   ;;  %s1619_s4 = inlined_call_operand.hbm [shape: bf16[32,64], index: 4, kind: input, shape index: {}]   ;;  %s1620_s5 = inlined_call_operand.vmem [shape: f32[1,64], index: 5, kind: input, shape index: {}]   ;;  %s1621_s6 = inlined_call_operand.vmem [shape: bf16[64,32], index: 6, kind: input, shape index: {}]   ;;  %s1622_s7 = inlined_call_operand.vmem [shape: f32[1,32], index: 7, kind: input, shape index: {}]   ;;  %s1623_s8 = inlined_call_operand.vmem [shape: f32[2,2], index: 8, kind: input, shape index: {}]   ;;  %s1624_s9 = inlined_call_operand.hbm [shape: f32[16,32], index: 9, kind: output, shape index: {}]  }
   0x1   :  { %15 = vsyncpa [#allocation7], 0 }
   0x2   :  { %16 = vsyncpa [#allocation5], 0 }
   0x3   :  { %17 = vsyncpa [#allocation4], 0  ;;  %s28_s11 = sshll.u32 %s1618_s3, 4  ;;  %s1306_s12 = smov [#allocation2]   ;;  %s29_s11 = int_to_ptr.hbm [resolvable:$true] %s28_s11 }
   0x4   :  { %s30_s13 = sshll.u32 %s1306_s12, 4  ;;  %s41_s16 = sshll.u32 %s1619_s4, 4  ;;  %s31_s13 = int_to_ptr.vmem [resolvable:$true] %s30_s13  ;;  %s42_s16 = int_to_ptr.hbm [resolvable:$true] %s41_s16 }
   0x5   :  { %s1307_s17 = smov 64   ;;  %s1308_s18 = smov 4  }
   0x6   :  { %36 = dma.hbm_to_vmem [thread:$0]  %s29_s11, 256, %s31_s13, [#allocation3], %s1307_s17, %s1307_s17, %s1308_s18  }
   0x7   :  { %s1309_s19 = smov [#allocation6]   ;;  %s61_s3 = sshll.u32 %s1623_s8, 4  ;;  %s62_s3 = int_to_ptr.vmem [resolvable:$true] %s61_s3 }
   0x8   :  { %s43_s20 = sshll.u32 %s1309_s19, 4  ;;  %s1310_s23 = smov [#allocation8]   ;;  %s44_s20 = int_to_ptr.vmem [resolvable:$true] %s43_s20 }
   0x9   :  { %49 = dma.hbm_to_vmem [thread:$0]  %s42_s16, 256, %s44_s20, [#allocation7], %s1307_s17, %s1307_s17, %s1308_s18  }
   0xa   :  { %64 = dma.vmem_to_smem %s62_s3, 32, %s1310_s23, [#allocation5]  }
   0xb   :  { %1298 = dma.done.wait [#allocation3], 256  }
   0xc   :  { %1299 = vsyncadd [#allocation3], 4294967040 }
   0xd   :  { %1300 = dma.done.wait [#allocation7], 256  }
   0xe   :  { %1301 = vsyncadd [#allocation7], 4294967040 }
   0xf   :  { %1302 = dma.done.wait [#allocation5], 32  }
  0x10   :  { %1303 = vsyncadd [#allocation5], 4294967264 }
  0x11   :  { %77 = sfence }
  0x12   :  { %v79_v0 = vld [vmem:[%s1615_s0] sm:$0xff]  ;;  %vm83_vm0 = vcmask 261120   ;;  %v80_v2 = vld [vmem:[%s1615_s0 + $0x8] sm:$0xff]  ;;  %v1311_v4 = vmov 32.0   ;;  %v1312_v21 = vmov 31.0   ;;  %s1072_s30 = sld [smem:[#allocation8 + $0x1]] }
  0x13   :  { %v84_v1 = vsel %vm83_vm0, %v79_v0, 0.0  ;;  %v87_v3 = vsel %vm83_vm0, %v80_v2, 0.0  ;;  %1160 = vrcp.f32 %v1311_v4  ;;  %v1131_v28 = vld [vmem:[%s1617_s2 + $0x8] sm:$0xff]  ;;  %v1130_v30 = vld [vmem:[%s1617_s2] sm:$0xff]  ;;  %s81_s2 = sld [smem:[#allocation8]]  ;;  %s1313_s10 = smov 96  }
  0x14   :  { %85 = vadd.xlane.f32.xlu0 %v84_v1  ;;  %1162 = vrcp.f32 %v1312_v21  ;;  %206 = vmatpush.bf16.msra.mxu0 %v1131_v28  ;;  %s1314_s11 = smov 88   ;;  %s1315_s12 = smov 120   ;;  %vm227_vm15 = vcmask 64512  }
  0x15   :  { %s1316_s13 = smov 56   ;;  %s1317_s16 = smov 80  }
  0x16   :  { %s1318_s20 = smov 112   ;;  %s1321_s21 = smov 104  }
  0x17   :  { %s1322_s22 = smov 40   ;;  %s1103_s8 = sld [smem:[#allocation8 + $0x81]] }
  0x18   :  { %207 = vmatpush.bf16.msra.mxu0 %v1130_v30  ;;  %s1057_s18 = sshll.u32 %s1624_s9, 4  ;;  %s1325_s19 = smov 8   ;;  %s1058_s18 = int_to_ptr.hbm [resolvable:$true] %s1057_s18 }
  0x19   :  { %v1161_v5 = vpop.eup %1160 }
  0x1a   :  { %v91_v6 = vmul.f32 32.0, %v1161_v5  ;;  %vm95_vm1 = vweird.f32 %v1161_v5  ;;  %v1163_v22 = vpop.eup %1162 }
  0x1b   :  { %v110_v23 = vmul.f32 31.0, %v1163_v22  ;;  %vm114_vm2 = vweird.f32 %v1163_v22 }
  0x1c   :  { %88 = vadd.xlane.f32.xlu0 %v87_v3  ;;  %v92_v7 = vsub.f32 1.0, %v91_v6  ;;  %v142_v3 = vstv %s81_s2 }
  0x1d   :  { %v111_v24 = vsub.f32 1.0, %v110_v23 }
  0x1e   :  { %v93_v8 = vmul.f32 %v1161_v5, %v92_v7 }
  0x1f   :  { %v112_v25 = vmul.f32 %v1163_v22, %v111_v24 }
  0x20   :  { %v94_v9 = vadd.f32 %v1161_v5, %v93_v8 }
  0x21   :  { %v113_v26 = vadd.f32 %v1163_v22, %v112_v25 }
  0x22   :  { %v1397_v10 = vsel %vm95_vm1, %v1161_v5, %v94_v9  ;;  %vm326_vm1 = vcmask 1043456  }
  0x23   :  { %v1411_v27 = vsel %vm114_vm2, %v1163_v22, %v113_v26 }
  0x87   :  { %v86_v11 = vpop.xlane.xlu0 %85 }
  0x88   :  { %v97_v12 = vmul.f32 %v1397_v10, %v86_v11 }
  0x8a   :  { %v1400_v13 = vsub.f32 %v79_v0, %v97_v12 }
  0x8c   :  { %v101_v14 = vmul.f32 %v1400_v13, %v1400_v13  ;;  %v143_v9 = vmul.f32 %v142_v3, %v1400_v13 }
  0x8e   :  { %v103_v15 = vsel %vm83_vm0, %v101_v14, 0.0 }
  0x8f   :  { %104 = vadd.xlane.f32.xlu1 %v103_v15  ;;  %v89_v16 = vpop.xlane.xlu0 %88 }
  0x90   :  { %v98_v17 = vmul.f32 %v1397_v10, %v89_v16 }
  0x92   :  { %v1406_v18 = vsub.f32 %v80_v2, %v98_v17 }
  0x94   :  { %v102_v19 = vmul.f32 %v1406_v18, %v1406_v18  ;;  %v144_v14 = vmul.f32 %v142_v3, %v1406_v18 }
  0x96   :  { %v106_v20 = vsel %vm83_vm0, %v102_v19, 0.0  ;;  %v177_v19 = vstv %s1072_s30 }
  0x97   :  { %107 = vadd.xlane.f32.xlu1 %v106_v20 }
 0x102   :  { %v105_v29 = vpop.xlane.xlu1 %104 }
 0x103   :  { %v116_v31 = vmul.f32 %v1411_v27, %v105_v29 }
 0x105   :  { %1164 = vrsqrt.f32 %v116_v31  ;;  %vm125_vm3 = vcmp.eq.f32.partialorder %v116_v31, inf  ;;  %v128_v44 = vand.u32 2147483648, %v116_v31  ;;  %vm127_vm4 = vcmp.eq.f32.partialorder %v116_v31, 0.0 }
 0x10a   :  { %v108_v32 = vpop.xlane.xlu1 %107 }
 0x10b   :  { %v1165_v33 = vpop.eup %1164  ;;  %v117_v34 = vmul.f32 %v1411_v27, %v108_v32 }
 0x10c   :  { %v119_v35 = vmul.f32 %v1165_v33, %v116_v31 }
 0x10d   :  { %1166 = vrsqrt.f32 %v117_v34  ;;  %vm137_vm5 = vcmp.eq.f32.partialorder %v117_v34, inf  ;;  %v140_v52 = vand.u32 2147483648, %v117_v34  ;;  %vm139_vm6 = vcmp.eq.f32.partialorder %v117_v34, 0.0 }
 0x10e   :  { %v120_v36 = vmul.f32 %v1165_v33, %v119_v35 }
 0x110   :  { %v121_v37 = vmul.f32 0.5, %v120_v36 }
 0x112   :  { %v122_v38 = vsub.f32 1.5, %v121_v37 }
 0x113   :  { %v1167_v39 = vpop.eup %1166 }
 0x114   :  { %v123_v40 = vmul.f32 %v1165_v33, %v122_v38  ;;  %v131_v41 = vmul.f32 %v1167_v39, %v117_v34 }
 0x116   :  { %v124_v42 = vmul.f32 %v123_v40, %v116_v31  ;;  %v132_v43 = vmul.f32 %v1167_v39, %v131_v41 }
 0x118   :  { %v126_v45 = vsel %vm125_vm3, %v116_v31, %v124_v42  ;;  %v133_v46 = vmul.f32 0.5, %v132_v43  ;;  %v1448_v43 = vld [vmem:[%s1616_s1] sm:$0xff] }
 0x119   :  { %v129_v47 = vsel %vm127_vm4, %v128_v44, %v126_v45 }
 0x11a   :  { %v134_v48 = vsub.f32 1.5, %v133_v46  ;;  %v145_v49 = vadd.f32 1e-06, %v129_v47 }
 0x11c   :  { %v135_v50 = vmul.f32 %v1167_v39, %v134_v48  ;;  %1168 = vrcp.f32 %v145_v49  ;;  %v158_v62 = vand.u32 2147483648, %v145_v49  ;;  %vm152_vm8 = vweird.f32 %v145_v49 }
 0x11d   :  { %v156_v63 = vand.u32 2147483647, %v145_v49 }
 0x11e   :  { %v136_v51 = vmul.f32 %v135_v50, %v117_v34  ;;  %v159_v4 = vor.u32 1.1754944e-38, %v158_v62 }
 0x11f   :  { %vm157_vm10 = vcmp.eq.f32.partialorder %v156_v63, 8.507059e+37 }
 0x120   :  { %v138_v53 = vsel %vm137_vm5, %v117_v34, %v136_v51 }
 0x121   :  { %v141_v54 = vsel %vm139_vm6, %v140_v52, %v138_v53  ;;  %v1459_v52 = vld [vmem:[%s1616_s1 + $0x8] sm:$0xff]  ;;  %s1319_s1 = smov 48  }
 0x122   :  { %v1169_v55 = vpop.eup %1168  ;;  %v146_v56 = vadd.f32 1e-06, %v141_v54 }
 0x123   :  { %v148_v57 = vmul.f32 %v1169_v55, %v145_v49  ;;  %vm153_vm7 = vweird.f32 %v1169_v55 }
 0x124   :  { %1170 = vrcp.f32 %v146_v56  ;;  %vm154_vm9 = vmor %vm152_vm8, %vm153_vm7  ;;  %v173_v5 = vand.u32 2147483648, %v146_v56  ;;  %v171_v7 = vand.u32 2147483647, %v146_v56  ;;  %vm167_vm12 = vweird.f32 %v146_v56 }
 0x125   :  { %v149_v58 = vsub.f32 1.0, %v148_v57 }
 0x126   :  { %v174_v12 = vor.u32 1.1754944e-38, %v173_v5  ;;  %vm172_vm14 = vcmp.eq.f32.partialorder %v171_v7, 8.507059e+37 }
 0x127   :  { %v150_v59 = vmul.f32 %v1169_v55, %v149_v58 }
 0x129   :  { %v151_v60 = vadd.f32 %v1169_v55, %v150_v59 }
 0x12a   :  { %v1171_v61 = vpop.eup %1170 }
 0x12b   :  { %v163_v0 = vmul.f32 %v1171_v61, %v146_v56  ;;  %v155_v1 = vsel %vm154_vm9, %v1169_v55, %v151_v60  ;;  %vm168_vm11 = vweird.f32 %v1171_v61 }
 0x12c   :  { %v160_v8 = vsel %vm157_vm10, %v159_v4, %v155_v1  ;;  %vm169_vm13 = vmor %vm167_vm12, %vm168_vm11 }
 0x12d   :  { %v164_v2 = vsub.f32 1.0, %v163_v0  ;;  %v161_v15 = vmul.f32 %v160_v8, %v143_v9 }
 0x12f   :  { %v165_v6 = vmul.f32 %v1171_v61, %v164_v2  ;;  %v178_v21 = vadd.f32 %v177_v19, %v161_v15 }
 0x131   :  { %v166_v11 = vadd.f32 %v1171_v61, %v165_v6 }
 0x133   :  { %v170_v16 = vsel %vm169_vm13, %v1171_v61, %v166_v11 }
 0x134   :  { %v175_v17 = vsel %vm172_vm14, %v174_v12, %v170_v16 }
 0x135   :  { %v176_v20 = vmul.f32 %v175_v17, %v144_v14 }
 0x137   :  { %v179_v22 = vadd.f32 %v177_v19, %v176_v20 }
 0x139   :  { %v180_v23 = vpack.c.bf16 %v179_v22, %v178_v21 }
 0x13b   :  { %1081 = vmatmul.msk.bf16.vlgmr.msra.gmra.mxu0 %vm83_vm0, %v180_v23 }
 0x1b8   :  { %v209_v24 = vpop.f32.mrf.mxu0 }
 0x1b9   :  { %v220_v25 = vpack.c.bf16 %v209_v24, %v209_v24 }
 0x1bb   :  { %v223_v13 = vunpack.c.l.b16 %v220_v25 }
 0x1bd   :  { %v1424_v26 = vpack.c.b16 %v223_v13, %v223_v13 }
 0x1bf   :  { %225 = vrot.lane.b32.xlu0 %v1424_v26, %s1313_s10  ;;  %367 = vrot.lane.b32.xlu2 %v1424_v26, %s1314_s11 }
 0x1c0   :  { %v211_v18 = vpop.f32.mrf.mxu0 }
 0x1c1   :  { %v221_v28 = vpack.c.bf16 %v211_v18, %v211_v18 }
 0x1c3   :  { %v248_v29 = vunpack.c.l.b16 %v221_v28 }
 0x1c5   :  { %v1428_v30 = vpack.c.b16 %v248_v29, %v248_v29 }
 0x1c7   :  { %365 = vrot.lane.b32.xlu2 %v1424_v26, %s1315_s12  ;;  %250 = vrot.lane.b32.xlu1 %v1428_v30, %s1313_s10 }
 0x1cf   :  { %390 = vrot.lane.b32.xlu2 %v1428_v30, %s1314_s11  ;;  %461 = vrot.lane.b32.xlu1 %v1424_v26, %s1316_s13 }
 0x1d7   :  { %388 = vrot.lane.b32.xlu2 %v1428_v30, %s1315_s12 }
 0x219   :  { %v368_v31 = vpop.permute.xlu2 %367 }
 0x21a   :  { %v373_v32 = vsel %vm227_vm15, %v368_v31, 0 }
 0x21b   :  { %382 = vmatpush.bf16.xpose.msrb.mxu0 %v373_v32 }
 0x221   :  { %v366_v33 = vpop.permute.xlu2 %365 }
 0x222   :  { %1086 = vmatmul.msk.bf16.vlgmr.msrb.gmra.mxu0 %vm227_vm15, %v366_v33 }
 0x229   :  { %v391_v34 = vpop.permute.xlu2 %390 }
 0x22a   :  { %v396_v37 = vsel %vm227_vm15, %v391_v34, 0 }
 0x231   :  { %v226_v35 = vpop.permute.xlu0 %225  ;;  %v389_v42 = vpop.permute.xlu2 %388 }
 0x232   :  { %v232_v36 = vsel %vm227_vm15, %v226_v35, 0 }
 0x233   :  { %241 = vmatpush.bf16.xpose.msra.mxu1 %v232_v36 }
 0x239   :  { %v251_v38 = vpop.permute.xlu1 %250 }
 0x23a   :  { %1082 = vmatmul.msk.bf16.vlgmr.msra.gmra.mxu1 %vm227_vm15, %v220_v25  ;;  %v256_v39 = vsel %vm227_vm15, %v251_v38, 0 }
 0x23b   :  { %405 = vmatpush.bf16.xpose.msrb.mxu1 %v396_v37  ;;  %265 = vmatpush.bf16.xpose.msra.mxu2 %v256_v39 }
 0x241   :  { %v462_v40 = vpop.permute.xlu1 %461 }
 0x242   :  { %1083 = vmatmul.msk.bf16.vlgmr.msra.gmra.mxu2 %vm227_vm15, %v221_v28  ;;  %v467_v41 = vsel %vm326_vm1, %v462_v40, 0 }
 0x243   :  { %476 = vmatpush.bf16.msrb.mxu2 %v467_v41 }
 0x24a   :  { %1087 = vmatmul.msk.bf16.vlgmr.msrb.gmra.mxu1 %vm227_vm15, %v389_v42 }
 0x29f   :  { %v384_v44 = vpop.f32.mrf.mxu0 }
 0x2a0   :  { %v385_v45 = vadd.f32 %v384_v44, %v1448_v43 }
 0x2a2   :  { %v411_v46 = vsel %vm227_vm15, %v385_v45, -inf }
 0x2a3   :  { %412 = vmax.xlane.f32.xlu2 %v411_v46 }
 0x2a7   :  { %v386_v47 = vpop.f32.mrf.mxu0 }
 0x2b7   :  { %v243_v48 = vpop.f32.mrf.mxu1 }
 0x2b8   :  { %v244_v49 = vadd.f32 %v243_v48, %v1448_v43 }
 0x2ba   :  { %v271_v50 = vsel %vm227_vm15, %v244_v49, -inf }
 0x2bb   :  { %546 = vrot.lane.b32.xlu2 %v1424_v26, %s1317_s16  ;;  %272 = vmax.xlane.f32.xlu1 %v271_v50 }
 0x2bf   :  { %v245_v51 = vpop.f32.mrf.mxu1 }
 0x2c5   :  { %v267_v53 = vpop.f32.mrf.mxu2 }
 0x2c6   :  { %v268_v54 = vadd.f32 %v267_v53, %v1459_v52 }
 0x2c7   :  { %v407_v55 = vpop.f32.mrf.mxu1 }
 0x2c8   :  { %v274_v56 = vsel %vm227_vm15, %v268_v54, -inf  ;;  %v408_v59 = vadd.f32 %v407_v55, %v1459_v52 }
 0x2c9   :  { %275 = vmax.xlane.f32.xlu1 %v274_v56 }
 0x2ca   :  { %v414_v60 = vsel %vm227_vm15, %v408_v59, -inf }
 0x2cd   :  { %v269_v57 = vpop.f32.mrf.mxu2 }
 0x2cf   :  { %v409_v58 = vpop.f32.mrf.mxu1 }
 0x2e4   :  { %415 = vmax.xlane.f32.xlu2 %v414_v60 }
 0x2fc   :  { %343 = vrot.lane.b32.xlu2 %v1428_v30, %s1307_s17 }
 0x304   :  { %567 = vrot.lane.b32.xlu2 %v1428_v30, %s1318_s20 }
 0x316   :  { %v413_v61 = vpop.xlane.xlu2 %412 }
 0x317   :  { %v417_v62 = vsub.f32 %v385_v45, %v413_v61 }
 0x319   :  { %v419_v63 = vmul.f32 1.442695, %v417_v62 }
 0x31b   :  { %1172 = vpow2.f32 %v419_v63 }
 0x31e   :  { %v547_v0 = vpop.permute.xlu2 %546 }
 0x31f   :  { %v552_v1 = vsel %vm227_vm15, %v547_v0, 0 }
 0x320   :  { %561 = vmatpush.bf16.xpose.msra.mxu2 %v552_v1 }
 0x321   :  { %v1173_v2 = vpop.eup %1172 }
 0x322   :  { %v423_v3 = vsel %vm227_vm15, %v1173_v2, 0.0 }
 0x323   :  { %424 = vadd.xlane.f32.xlu0 %v423_v3 }
 0x32e   :  { %v273_v4 = vpop.xlane.xlu1 %272 }
 0x32f   :  { %v277_v11 = vsub.f32 %v244_v49, %v273_v4 }
 0x331   :  { %v279_v12 = vmul.f32 1.442695, %v277_v11 }
 0x337   :  { %544 = vrot.lane.b32.xlu0 %v1424_v26, %s1318_s20 }
 0x33c   :  { %v276_v5 = vpop.xlane.xlu1 %275 }
 0x33d   :  { %v278_v6 = vsub.f32 %v268_v54, %v276_v5 }
 0x33f   :  { %v281_v7 = vmul.f32 1.442695, %v278_v6 }
 0x341   :  { %1174 = vpow2.f32 %v281_v7  ;;  %v217_v7 = vld [vmem:[#allocation2 + $0x4] sm:$0xf] }
 0x342   :  { %1176 = vpow2.f32 %v279_v12  ;;  %v508_v11 = vsel %vm326_vm1, %v217_v7, 0 }
 0x343   :  { %517 = vmatpush.bf16.msra.mxu0 %v508_v11 }
 0x347   :  { %v1471_v8 = vpop.eup %1174 }
 0x348   :  { %v286_v9 = vsel %vm227_vm15, %v1471_v8, 0.0  ;;  %v1475_v14 = vpop.eup %1176 }
 0x349   :  { %287 = vadd.xlane.f32.xlu1 %v286_v9  ;;  %v283_v15 = vsel %vm227_vm15, %v1475_v14, 0.0 }
 0x357   :  { %v416_v16 = vpop.xlane.xlu2 %415 }
 0x358   :  { %v418_v17 = vsub.f32 %v408_v59, %v416_v16 }
 0x35a   :  { %v421_v19 = vmul.f32 1.442695, %v418_v17 }
 0x35c   :  { %1178 = vpow2.f32 %v421_v19 }
 0x35f   :  { %v344_v38 = vpop.permute.xlu2 %343 }
 0x360   :  { %v349_v42 = vsel %vm326_vm1, %v344_v38, 0 }
 0x361   :  { %284 = vadd.xlane.f32.xlu0 %v283_v15 }
 0x362   :  { %321 = vrot.lane.b32.xlu1 %v1424_v26, %s1307_s17  ;;  %v1485_v20 = vpop.eup %1178  ;;  %s1320_s17 = smov 72  }
 0x363   :  { %v426_v21 = vsel %vm227_vm15, %v1485_v20, 0.0 }
 0x375   :  { %482 = vrot.lane.b32.xlu0 %v1428_v30, %s1316_s13 }
 0x37d   :  { %569 = vrot.lane.b32.xlu0 %v1428_v30, %s1317_s16 }
 0x38c   :  { %427 = vadd.xlane.f32.xlu1 %v426_v21 }
 0x396   :  { %v425_v22 = vpop.xlane.xlu0 %424 }
 0x397   :  { %1180 = vrcp.f32 %v425_v22  ;;  %v440_v13 = vand.u32 2147483648, %v425_v22  ;;  %v438_v28 = vand.u32 2147483647, %v425_v22  ;;  %vm434_vm3 = vweird.f32 %v425_v22 }
 0x399   :  { %v441_v31 = vor.u32 1.1754944e-38, %v440_v13  ;;  %vm439_vm5 = vcmp.eq.f32.partialorder %v438_v28, 8.507059e+37 }
 0x39d   :  { %v1181_v23 = vpop.eup %1180 }
 0x39e   :  { %v430_v24 = vmul.f32 %v1181_v23, %v425_v22  ;;  %vm435_vm2 = vweird.f32 %v1181_v23 }
 0x39f   :  { %vm436_vm4 = vmor %vm434_vm3, %vm435_vm2 }
 0x3a0   :  { %v431_v25 = vsub.f32 1.0, %v430_v24 }
 0x3a2   :  { %v432_v18 = vmul.f32 %v1181_v23, %v431_v25 }
 0x3a4   :  { %v433_v29 = vadd.f32 %v1181_v23, %v432_v18 }
 0x3a5   :  { %640 = vrot.lane.b32.xlu1 %v1424_v26, %s1319_s1 }
 0x3a6   :  { %v437_v32 = vsel %vm436_vm4, %v1181_v23, %v433_v29 }
 0x3a7   :  { %v442_v33 = vsel %vm439_vm5, %v441_v31, %v437_v32 }
 0x3a8   :  { %v443_v34 = vmul.f32 %v1173_v2, %v442_v33  ;;  %v568_v33 = vpop.permute.xlu2 %567 }
 0x3a9   :  { %v545_v36 = vpop.permute.xlu0 %544 }
 0x3aa   :  { %v459_v35 = vpack.c.bf16 %v443_v34, %v443_v34 }
 0x3ac   :  { %1088 = vmatmul.msk.bf16.vlgmr.msrb.gmra.mxu2 %vm227_vm15, %v459_v35 }
 0x3ad   :  { %707 = vrot.lane.b32.xlu1 %v1424_v26, %s1320_s17 }
 0x3b5   :  { %730 = vrot.lane.b32.xlu1 %v1428_v30, %s1320_s17 }
 0x3bc   :  { %1092 = vmatmul.msk.bf16.vlgmr.msra.gmra.mxu2 %vm227_vm15, %v545_v36  ;;  %v288_v37 = vpop.xlane.xlu1 %287 }
 0x3bd   :  { %1182 = vrcp.f32 %v288_v37  ;;  %v315_v0 = vand.u32 2147483648, %v288_v37  ;;  %vm309_vm11 = vweird.f32 %v288_v37  ;;  %v313_v1 = vand.u32 2147483647, %v288_v37 }
 0x3bf   :  { %v316_v3 = vor.u32 1.1754944e-38, %v315_v0  ;;  %vm314_vm13 = vcmp.eq.f32.partialorder %v313_v1, 8.507059e+37 }
 0x3c3   :  { %v1183_v44 = vpop.eup %1182 }
 0x3c4   :  { %v305_v47 = vmul.f32 %v1183_v44, %v288_v37  ;;  %vm310_vm10 = vweird.f32 %v1183_v44 }
 0x3c5   :  { %vm311_vm12 = vmor %vm309_vm11, %vm310_vm10 }
 0x3c6   :  { %v306_v53 = vsub.f32 1.0, %v305_v47 }
 0x3c8   :  { %v307_v58 = vmul.f32 %v1183_v44, %v306_v53 }
 0x3ca   :  { %v308_v63 = vadd.f32 %v1183_v44, %v307_v58 }
 0x3cc   :  { %v312_v2 = vsel %vm311_vm12, %v1183_v44, %v308_v63 }
 0x3cd   :  { %v317_v4 = vsel %vm314_vm13, %v316_v3, %v312_v2 }
 0x3ce   :  { %v318_v5 = vmul.f32 %v1471_v8, %v317_v4 }
 0x3d0   :  { %v320_v9 = vpack.c.bf16 %v318_v5, %v318_v5 }
 0x3d4   :  { %v285_v39 = vpop.xlane.xlu0 %284  ;;  %v322_v40 = vpop.permute.xlu1 %321 }
 0x3d5   :  { %1184 = vrcp.f32 %v285_v39  ;;  %v328_v41 = vsel %vm326_vm1, %v322_v40, 0  ;;  %v300_v49 = vand.u32 2147483648, %v285_v39  ;;  %v298_v51 = vand.u32 2147483647, %v285_v39 }
 0x3d6   :  { %337 = vmatpush.bf16.msra.mxu3 %v328_v41  ;;  %vm294_vm7 = vweird.f32 %v285_v39 }
 0x3d7   :  { %v301_v55 = vor.u32 1.1754944e-38, %v300_v49  ;;  %vm299_vm9 = vcmp.eq.f32.partialorder %v298_v51, 8.507059e+37 }
 0x3da   :  { %358 = vmatpush.bf16.msrb.mxu3 %v349_v42 }
 0x3db   :  { %v1185_v45 = vpop.eup %1184 }
 0x3dc   :  { %v290_v46 = vmul.f32 %v1185_v45, %v285_v39  ;;  %vm295_vm6 = vweird.f32 %v1185_v45  ;;  %v216_v39 = vld [vmem:[#allocation2] sm:$0xf] }
 0x3dd   :  { %vm296_vm8 = vmor %vm294_vm7, %vm295_vm6  ;;  %v528_v40 = vsel %vm326_vm1, %v216_v39, 0 }
 0x3de   :  { %v291_v48 = vsub.f32 1.0, %v290_v46  ;;  %537 = vmatpush.bf16.msra.mxu1 %v528_v40 }
 0x3e0   :  { %v292_v50 = vmul.f32 %v1185_v45, %v291_v48 }
 0x3e2   :  { %v293_v54 = vadd.f32 %v1185_v45, %v292_v50 }
 0x3e4   :  { %v297_v56 = vsel %vm296_vm8, %v1185_v45, %v293_v54 }
 0x3e5   :  { %v302_v57 = vsel %vm299_vm9, %v301_v55, %v297_v56 }
 0x3e6   :  { %v303_v59 = vmul.f32 %v1475_v14, %v302_v57 }
 0x3e7   :  { %v483_v60 = vpop.permute.xlu0 %482 }
 0x3e8   :  { %v488_v61 = vsel %vm326_vm1, %v483_v60, 0  ;;  %v319_v62 = vpack.c.bf16 %v303_v59, %v303_v59 }
 0x3ea   :  { %1084 = vmatmul.msk.bf16.vlgmr.msra.gmra.mxu3 %vm227_vm15, %v319_v62 }
 0x3eb   :  { %497 = vmatpush.bf16.msra.mxu3 %v488_v61 }
 0x3ef   :  { %v570_v6 = vpop.permute.xlu0 %569 }
 0x3f0   :  { %v575_v12 = vsel %vm227_vm15, %v570_v6, 0 }
 0x3fa   :  { %1085 = vmatmul.msk.bf16.vlgmr.msrb.gmra.mxu3 %vm227_vm15, %v320_v9 }
 0x3fb   :  { %584 = vmatpush.bf16.xpose.msrb.mxu3 %v575_v12 }
 0x3ff   :  { %v428_v14 = vpop.xlane.xlu1 %427 }
 0x400   :  { %1186 = vrcp.f32 %v428_v14  ;;  %v455_v19 = vand.u32 2147483648, %v428_v14  ;;  %v453_v8 = vand.u32 2147483647, %v428_v14  ;;  %vm449_vm2 = vweird.f32 %v428_v14 }
 0x402   :  { %v456_v23 = vor.u32 1.1754944e-38, %v455_v19  ;;  %vm454_vm4 = vcmp.eq.f32.partialorder %v453_v8, 8.507059e+37 }
 0x406   :  { %v1187_v15 = vpop.eup %1186 }
 0x407   :  { %v445_v16 = vmul.f32 %v1187_v15, %v428_v14  ;;  %vm450_vm14 = vweird.f32 %v1187_v15 }
 0x408   :  { %vm451_vm3 = vmor %vm449_vm2, %vm450_vm14 }
 0x409   :  { %v446_v17 = vsub.f32 1.0, %v445_v16 }
 0x40b   :  { %v447_v21 = vmul.f32 %v1187_v15, %v446_v17 }
 0x40d   :  { %v448_v22 = vadd.f32 %v1187_v15, %v447_v21 }
 0x40f   :  { %v452_v24 = vsel %vm451_vm3, %v1187_v15, %v448_v22 }
 0x410   :  { %v457_v25 = vsel %vm454_vm4, %v456_v23, %v452_v24 }
 0x411   :  { %v458_v13 = vmul.f32 %v1485_v20, %v457_v25 }
 0x413   :  { %v460_v18 = vpack.c.bf16 %v458_v13, %v458_v13 }
 0x415   :  { %1089 = vmatmul.msk.bf16.vlgmr.msra.gmra.mxu3 %vm227_vm15, %v460_v18 }
 0x417   :  { %v641_v28 = vpop.permute.xlu1 %640 }
 0x418   :  { %v646_v29 = vsel %vm326_vm1, %v641_v28, 0 }
 0x419   :  { %655 = vmatpush.bf16.msrb.mxu0 %v646_v29 }
 0x41f   :  { %v708_v31 = vpop.permute.xlu1 %707 }
 0x420   :  { %v713_v32 = vsel %vm227_vm15, %v708_v31, 0 }
 0x421   :  { %722 = vmatpush.bf16.xpose.msra.mxu3 %v713_v32 }
 0x425   :  { %1093 = vmatmul.msk.bf16.vlgmr.msrb.gmra.mxu3 %vm227_vm15, %v568_v33 }
 0x427   :  { %v731_v47 = vpop.permute.xlu1 %730 }
 0x428   :  { %v736_v50 = vsel %vm227_vm15, %v731_v47, 0 }
 0x42f   :  { %v478_v34 = vpop.f32.mrf.mxu2 }
 0x437   :  { %v480_v35 = vpop.f32.mrf.mxu2 }
 0x43f   :  { %v563_v36 = vpop.f32.mrf.mxu2 }
 0x440   :  { %v564_v37 = vadd.f32 %v563_v36, %v1448_v43 }
 0x442   :  { %v590_v20 = vsel %vm227_vm15, %v564_v37, -inf }
 0x443   :  { %591 = vmax.xlane.f32.xlu0 %v590_v20 }
 0x447   :  { %v565_v38 = vpop.f32.mrf.mxu2 }
 0x457   :  { %705 = vrot.lane.b32.xlu0 %v1424_v26, %s1321_s21 }
 0x46d   :  { %v339_v41 = vpop.f32.mrf.mxu3 }
 0x475   :  { %v341_v42 = vpop.f32.mrf.mxu3 }
 0x47d   :  { %v360_v44 = vpop.f32.mrf.mxu3 }
 0x47e   :  { %v364_v45 = vpack.c.bf16 %v360_v44, %v339_v41 }
 0x480   :  { %1091 = vmatmul.msk.bf16.vlgmr.msra.gmra.mxu1 %vm227_vm15, %v364_v45 }
 0x485   :  { %v362_v46 = vpop.f32.mrf.mxu3 }
 0x498   :  { %v499_v48 = vpop.f32.mrf.mxu3 }
 0x499   :  { %v503_v49 = vpack.c.bf16 %v499_v48, %v478_v34 }
 0x49b   :  { %1090 = vmatmul.msk.bf16.vlgmr.msra.gmra.mxu0 %vm227_vm15, %v503_v49 }
 0x49c   :  { %745 = vmatpush.bf16.xpose.msra.mxu0 %v736_v50 }
 0x4a0   :  { %v501_v51 = vpop.f32.mrf.mxu3 }
 0x4a8   :  { %v586_v53 = vpop.f32.mrf.mxu3 }
 0x4a9   :  { %v587_v54 = vadd.f32 %v586_v53, %v1459_v52 }
 0x4ab   :  { %v593_v55 = vsel %vm227_vm15, %v587_v54, -inf }
 0x4ac   :  { %594 = vmax.xlane.f32.xlu1 %v593_v55 }
 0x4b0   :  { %v588_v56 = vpop.f32.mrf.mxu3 }
 0x4b6   :  { %v592_v57 = vpop.xlane.xlu0 %591 }
 0x4b7   :  { %v596_v58 = vsub.f32 %v564_v37, %v592_v57  ;;  %v218_v57 = vld [vmem:[#allocation2 + $0x8] sm:$0xf] }
 0x4b9   :  { %v598_v59 = vmul.f32 1.442695, %v596_v58  ;;  %v687_v58 = vsel %vm326_vm1, %v218_v57, 0 }
 0x4ba   :  { %696 = vmatpush.bf16.msrb.mxu2 %v687_v58 }
 0x4bb   :  { %1188 = vpow2.f32 %v598_v59 }
 0x4c1   :  { %v1189_v60 = vpop.eup %1188 }
 0x4c2   :  { %v602_v61 = vsel %vm227_vm15, %v1189_v60, 0.0 }
 0x4c3   :  { %603 = vadd.xlane.f32.xlu2 %v602_v61 }
 0x4c9   :  { %v706_v62 = vpop.permute.xlu0 %705 }
 0x4ca   :  { %1097 = vmatmul.msk.bf16.vlgmr.msra.gmra.mxu3 %vm227_vm15, %v706_v62 }
 0x4db   :  { %728 = vrot.lane.b32.xlu2 %v1428_v30, %s1321_s21 }
 0x4e3   :  { %661 = vrot.lane.b32.xlu2 %v1428_v30, %s1319_s1 }
 0x4fd   :  { %v539_v63 = vpop.f32.mrf.mxu1 }
 0x505   :  { %v1542_v59 = vpop.f32.mrf.mxu1 }
 0x518   :  { %v519_v0 = vpop.f32.mrf.mxu0 }
 0x519   :  { %v1525_v1 = vadd.f32 %v539_v63, %v519_v0 }
 0x51f   :  { %v595_v2 = vpop.xlane.xlu1 %594 }
 0x520   :  { %v597_v3 = vsub.f32 %v587_v54, %v595_v2  ;;  %v1534_v44 = vpop.f32.mrf.mxu0 }
 0x522   :  { %v600_v4 = vmul.f32 1.442695, %v597_v3 }
 0x524   :  { %1190 = vpow2.f32 %v600_v4 }
 0x52a   :  { %v1191_v5 = vpop.eup %1190 }
 0x52b   :  { %v605_v6 = vsel %vm227_vm15, %v1191_v5, 0.0 }
 0x52c   :  { %606 = vadd.xlane.f32.xlu0 %v605_v6 }
 0x536   :  { %v604_v7 = vpop.xlane.xlu2 %603 }
 0x537   :  { %1192 = vrcp.f32 %v604_v7  ;;  %v619_v15 = vand.u32 2147483648, %v604_v7  ;;  %v617_v17 = vand.u32 2147483647, %v604_v7  ;;  %vm613_vm6 = vweird.f32 %v604_v7 }
 0x539   :  { %v620_v21 = vor.u32 1.1754944e-38, %v619_v15  ;;  %vm618_vm8 = vcmp.eq.f32.partialorder %v617_v17, 8.507059e+37 }
 0x53d   :  { %v1193_v9 = vpop.eup %1192 }
 0x53e   :  { %v609_v11 = vmul.f32 %v1193_v9, %v604_v7  ;;  %v729_v12 = vpop.permute.xlu2 %728  ;;  %vm614_vm5 = vweird.f32 %v1193_v9 }
 0x53f   :  { %vm615_vm7 = vmor %vm613_vm6, %vm614_vm5 }
 0x540   :  { %v610_v14 = vsub.f32 1.0, %v609_v11 }
 0x542   :  { %v611_v16 = vmul.f32 %v1193_v9, %v610_v14 }
 0x544   :  { %v612_v19 = vadd.f32 %v1193_v9, %v611_v16 }
 0x546   :  { %v616_v8 = vsel %vm615_vm7, %v1193_v9, %v612_v19  ;;  %v662_v22 = vpop.permute.xlu2 %661 }
 0x547   :  { %v621_v23 = vsel %vm618_vm8, %v620_v21, %v616_v8  ;;  %v667_v24 = vsel %vm326_vm1, %v662_v22, 0 }
 0x548   :  { %v622_v25 = vmul.f32 %v1189_v60, %v621_v23  ;;  %676 = vmatpush.bf16.msrb.mxu1 %v667_v24 }
 0x54a   :  { %v638_v13 = vpack.c.bf16 %v622_v25, %v622_v25 }
 0x54c   :  { %1094 = vmatmul.msk.bf16.vlgmr.msrb.gmra.mxu0 %vm227_vm15, %v638_v13 }
 0x54d   :  { %v724_v18 = vpop.f32.mrf.mxu3 }
 0x54e   :  { %v725_v28 = vadd.f32 %v724_v18, %v1448_v43 }
 0x550   :  { %v751_v29 = vsel %vm227_vm15, %v725_v28, -inf }
 0x551   :  { %752 = vmax.xlane.f32.xlu1 %v751_v29 }
 0x555   :  { %v726_v31 = vpop.f32.mrf.mxu3 }
 0x55c   :  { %1098 = vmatmul.msk.bf16.vlgmr.msra.gmra.mxu0 %vm227_vm15, %v729_v12 }
 0x59f   :  { %v607_v32 = vpop.xlane.xlu0 %606 }
 0x5a0   :  { %1194 = vrcp.f32 %v607_v32  ;;  %v634_v36 = vand.u32 2147483648, %v607_v32  ;;  %v632_v20 = vand.u32 2147483647, %v607_v32  ;;  %vm628_vm10 = vweird.f32 %v607_v32 }
 0x5a2   :  { %v635_v39 = vor.u32 1.1754944e-38, %v634_v36  ;;  %vm633_vm12 = vcmp.eq.f32.partialorder %v632_v20, 8.507059e+37 }
 0x5a6   :  { %v1195_v33 = vpop.eup %1194 }
 0x5a7   :  { %v624_v34 = vmul.f32 %v1195_v33, %v607_v32  ;;  %vm629_vm9 = vweird.f32 %v1195_v33 }
 0x5a8   :  { %vm630_vm11 = vmor %vm628_vm10, %vm629_vm9 }
 0x5a9   :  { %v625_v35 = vsub.f32 1.0, %v624_v34 }
 0x5ab   :  { %v626_v37 = vmul.f32 %v1195_v33, %v625_v35 }
 0x5ad   :  { %v627_v38 = vadd.f32 %v1195_v33, %v626_v37 }
 0x5af   :  { %v631_v43 = vsel %vm630_vm11, %v1195_v33, %v627_v38 }
 0x5b0   :  { %v636_v40 = vsel %vm633_vm12, %v635_v39, %v631_v43  ;;  %v219_v39 = vld [vmem:[#allocation2 + $0xc] sm:$0xf] }
 0x5b1   :  { %v637_v41 = vmul.f32 %v1191_v5, %v636_v40  ;;  %v848_v43 = vsel %vm326_vm1, %v219_v39, 0 }
 0x5b2   :  { %857 = vmatpush.bf16.msrb.mxu3 %v848_v43 }
 0x5b3   :  { %v639_v42 = vpack.c.bf16 %v637_v41, %v637_v41 }
 0x5b5   :  { %1095 = vmatmul.msk.bf16.vlgmr.msrb.gmra.mxu1 %vm227_vm15, %v639_v42 }
 0x5c4   :  { %v753_v45 = vpop.xlane.xlu1 %752 }
 0x5c5   :  { %v757_v46 = vsub.f32 %v725_v28, %v753_v45 }
 0x5c7   :  { %v759_v47 = vmul.f32 1.442695, %v757_v46 }
 0x5c9   :  { %1196 = vpow2.f32 %v759_v47  ;;  %v657_v48 = vpop.f32.mrf.mxu0 }
 0x5cf   :  { %v1197_v49 = vpop.eup %1196 }
 0x5d0   :  { %v763_v50 = vsel %vm227_vm15, %v1197_v49, 0.0 }
 0x5d1   :  { %v659_v51 = vpop.f32.mrf.mxu0  ;;  %764 = vadd.xlane.f32.xlu0 %v763_v50  ;;  %v542_v50 = vadd.f32 %v1542_v59, %v1534_v44 }
 0x5d9   :  { %v747_v53 = vpop.f32.mrf.mxu0 }
 0x5da   :  { %v748_v54 = vadd.f32 %v747_v53, %v1459_v52 }
 0x5dc   :  { %v754_v55 = vsel %vm227_vm15, %v748_v54, -inf }
 0x5dd   :  { %755 = vmax.xlane.f32.xlu2 %v754_v55 }
 0x5e1   :  { %v749_v56 = vpop.f32.mrf.mxu0 }
 0x5e2   :  { %v1213_v56 = vld [vmem:[%s1615_s0 + $0x8] sm:$0xff] }
 0x5e5   :  { %801 = vrot.lane.b32.xlu0 %v1424_v26, %s1322_s22 }
 0x632   :  { %v678_v60 = vpop.f32.mrf.mxu1 }
 0x633   :  { %v682_v61 = vpack.c.bf16 %v678_v60, %v657_v48  ;;  %v1212_v48 = vld [vmem:[%s1615_s0] sm:$0xff]  ;;  %s1102_s0 = sld [smem:[#allocation8 + $0x80]] }
 0x635   :  { %1096 = vmatmul.msk.bf16.vlgmr.msrb.gmra.mxu2 %vm227_vm15, %v682_v61 }
 0x63a   :  { %v680_v62 = vpop.f32.mrf.mxu1 }
 0x644   :  { %v765_v52 = vpop.xlane.xlu0 %764 }
 0x645   :  { %1198 = vrcp.f32 %v765_v52  ;;  %v780_v3 = vand.u32 2147483648, %v765_v52  ;;  %v778_v26 = vand.u32 2147483647, %v765_v52  ;;  %vm774_vm14 = vweird.f32 %v765_v52 }
 0x647   :  { %v781_v9 = vor.u32 1.1754944e-38, %v780_v3  ;;  %vm779_vm3 = vcmp.eq.f32.partialorder %v778_v26, 8.507059e+37 }
 0x64b   :  { %v1199_v63 = vpop.eup %1198 }
 0x64c   :  { %v770_v0 = vmul.f32 %v1199_v63, %v765_v52  ;;  %vm775_vm13 = vweird.f32 %v1199_v63 }
 0x64d   :  { %vm776_vm2 = vmor %vm774_vm14, %vm775_vm13 }
 0x64e   :  { %v771_v2 = vsub.f32 1.0, %v770_v0 }
 0x650   :  { %v772_v4 = vmul.f32 %v1199_v63, %v771_v2  ;;  %v756_v5 = vpop.xlane.xlu2 %755 }
 0x651   :  { %v758_v6 = vsub.f32 %v748_v54, %v756_v5  ;;  %v1133_v5 = vld [vmem:[#allocation6 + $0x8] sm:$0xff] }
 0x652   :  { %v773_v7 = vadd.f32 %v1199_v63, %v772_v4  ;;  %982 = vmatpush.bf16.msrb.mxu0 %v1133_v5 }
 0x653   :  { %v761_v11 = vmul.f32 1.442695, %v758_v6  ;;  %v1132_v6 = vld [vmem:[#allocation6] sm:$0xff] }
 0x654   :  { %v777_v12 = vsel %vm776_vm2, %v1199_v63, %v773_v7 }
 0x655   :  { %v782_v14 = vsel %vm779_vm3, %v781_v9, %v777_v12  ;;  %1200 = vpow2.f32 %v761_v11 }
 0x656   :  { %v783_v15 = vmul.f32 %v1197_v49, %v782_v14  ;;  %983 = vmatpush.bf16.msrb.mxu0 %v1132_v6 }
 0x657   :  { %v802_v16 = vpop.permute.xlu0 %801 }
 0x658   :  { %v807_v17 = vsel %vm326_vm1, %v802_v16, 0  ;;  %v799_v19 = vpack.c.bf16 %v783_v15, %v783_v15 }
 0x659   :  { %816 = vmatpush.bf16.msra.mxu1 %v807_v17 }
 0x65b   :  { %v1201_v21 = vpop.eup %1200 }
 0x65c   :  { %1099 = vmatmul.msk.bf16.vlgmr.msra.gmra.mxu1 %vm227_vm15, %v799_v19  ;;  %v766_v8 = vsel %vm227_vm15, %v1201_v21, 0.0 }
 0x65d   :  { %767 = vadd.xlane.f32.xlu1 %v766_v8 }
 0x676   :  { %822 = vrot.lane.b32.xlu1 %v1428_v30, %s1322_s22 }
 0x6b8   :  { %v698_v22 = vpop.f32.mrf.mxu2 }
 0x6b9   :  { %v703_v23 = vadd.f32 %v698_v22, %v1525_v1 }
 0x6c0   :  { %v700_v40 = vpop.f32.mrf.mxu2 }
 0x6c1   :  { %v704_v53 = vadd.f32 %v700_v40, %v542_v50 }
 0x6d0   :  { %v768_v24 = vpop.xlane.xlu1 %767 }
 0x6d1   :  { %1202 = vrcp.f32 %v768_v24  ;;  %v795_v32 = vand.u32 2147483648, %v768_v24  ;;  %vm789_vm5 = vweird.f32 %v768_v24  ;;  %v793_v33 = vand.u32 2147483647, %v768_v24 }
 0x6d3   :  { %v796_v36 = vor.u32 1.1754944e-38, %v795_v32  ;;  %vm794_vm7 = vcmp.eq.f32.partialorder %v793_v33, 8.507059e+37 }
 0x6d7   :  { %v1203_v25 = vpop.eup %1202 }
 0x6d8   :  { %v785_v13 = vmul.f32 %v1203_v25, %v768_v24  ;;  %vm790_vm4 = vweird.f32 %v1203_v25 }
 0x6d9   :  { %v818_v18 = vpop.f32.mrf.mxu1  ;;  %vm791_vm6 = vmor %vm789_vm5, %vm790_vm4  ;;  %vm1029_vm5 = vcmask 523264  }
 0x6da   :  { %v786_v28 = vsub.f32 1.0, %v785_v13 }
 0x6dc   :  { %v787_v29 = vmul.f32 %v1203_v25, %v786_v28 }
 0x6de   :  { %v788_v31 = vadd.f32 %v1203_v25, %v787_v29 }
 0x6e0   :  { %v792_v34 = vsel %vm791_vm6, %v1203_v25, %v788_v31 }
 0x6e1   :  { %v820_v35 = vpop.f32.mrf.mxu1  ;;  %v797_v30 = vsel %vm794_vm7, %v796_v36, %v792_v34 }
 0x6e2   :  { %v798_v37 = vmul.f32 %v1201_v21, %v797_v30 }
 0x6e4   :  { %v800_v38 = vpack.c.bf16 %v798_v37, %v798_v37 }
 0x6e8   :  { %v823_v1 = vpop.permute.xlu1 %822 }
 0x6e9   :  { %v828_v20 = vsel %vm326_vm1, %v823_v1, 0 }
 0x6ea   :  { %837 = vmatpush.bf16.msra.mxu2 %v828_v20 }
 0x6ed   :  { %1100 = vmatmul.msk.bf16.vlgmr.msra.gmra.mxu2 %vm227_vm15, %v800_v38 }
 0x770   :  { %v839_v41 = vpop.f32.mrf.mxu2 }
 0x771   :  { %v843_v42 = vpack.c.bf16 %v839_v41, %v818_v18  ;;  %v914_v41 = vstv %s1102_s0 }
 0x773   :  { %1101 = vmatmul.msk.bf16.vlgmr.msrb.gmra.mxu3 %vm227_vm15, %v843_v42 }
 0x778   :  { %v841_v45 = vpop.f32.mrf.mxu2 }
 0x7f6   :  { %v859_v46 = vpop.f32.mrf.mxu3 }
 0x7f7   :  { %v864_v47 = vadd.f32 %v859_v46, %v703_v23 }
 0x7f9   :  { %v1558_v49 = vadd.f32 %v1212_v48, %v864_v47 }
 0x7fb   :  { %v870_v51 = vsel %vm83_vm0, %v1558_v49, 0.0 }
 0x7fc   :  { %871 = vadd.xlane.f32.xlu2 %v870_v51 }
 0x7fe   :  { %v861_v54 = vpop.f32.mrf.mxu3 }
 0x7ff   :  { %v865_v55 = vadd.f32 %v861_v54, %v704_v53 }
 0x801   :  { %v1567_v57 = vadd.f32 %v1213_v56, %v865_v55 }
 0x803   :  { %v873_v58 = vsel %vm83_vm0, %v1567_v57, 0.0 }
 0x804   :  { %874 = vadd.xlane.f32.xlu2 %v873_v58 }
 0x86f   :  { %v872_v60 = vpop.xlane.xlu2 %871 }
 0x870   :  { %v876_v44 = vmul.f32 %v872_v60, %v1397_v10  ;;  %v949_v60 = vstv %s1103_s8 }
 0x872   :  { %v1573_v59 = vsub.f32 %v1558_v49, %v876_v44 }
 0x874   :  { %v880_v61 = vmul.f32 %v1573_v59, %v1573_v59  ;;  %v915_v50 = vmul.f32 %v914_v41, %v1573_v59  ;;  %v1137_v59 = vld [vmem:[%s1621_s6 + $0x18] sm:$0xff] }
 0x875   :  { %1037 = vmatpush.bf16.msrb.mxu1 %v1137_v59 }
 0x876   :  { %v882_v62 = vsel %vm83_vm0, %v880_v61, 0.0 }
 0x877   :  { %883 = vadd.xlane.f32.xlu1 %v882_v62  ;;  %v875_v52 = vpop.xlane.xlu2 %874 }
 0x878   :  { %v877_v63 = vmul.f32 %v875_v52, %v1397_v10 }
 0x87a   :  { %v1580_v0 = vsub.f32 %v1567_v57, %v877_v63  ;;  %v1136_v63 = vld [vmem:[%s1621_s6 + $0x10] sm:$0xff] }
 0x87b   :  { %1038 = vmatpush.bf16.msrb.mxu1 %v1136_v63 }
 0x87c   :  { %v881_v2 = vmul.f32 %v1580_v0, %v1580_v0  ;;  %v916_v54 = vmul.f32 %v914_v41, %v1580_v0  ;;  %v1135_v0 = vld [vmem:[%s1621_s6 + $0x8] sm:$0xff] }
 0x87e   :  { %v885_v3 = vsel %vm83_vm0, %v881_v2, 0.0  ;;  %v1134_v2 = vld [vmem:[%s1621_s6] sm:$0xff]  ;;  %s1323_s6 = smov [#allocation9]  }
 0x87f   :  { %886 = vadd.xlane.f32.xlu0 %v885_v3  ;;  %1039 = vmatpush.bf16.msrb.mxu1 %v1135_v0 }
 0x883   :  { %1040 = vmatpush.bf16.msrb.mxu1 %v1134_v2 }
 0x8ea   :  { %v884_v4 = vpop.xlane.xlu1 %883 }
 0x8eb   :  { %v888_v26 = vmul.f32 %v884_v4, %v1411_v27  ;;  %v1158_v4 = vld [vmem:[%s1620_s5] ss:$0 sm:$0xff]  ;;  %s1055_s5 = sshll.u32 %s1323_s6, 4  ;;  %s1056_s5 = int_to_ptr.vmem [resolvable:$true] %s1055_s5 }
 0x8ed   :  { %1204 = vrsqrt.f32 %v888_v26  ;;  %vm897_vm15 = vcmp.eq.f32.partialorder %v888_v26, inf  ;;  %v900_v22 = vand.u32 2147483648, %v888_v26  ;;  %vm899_vm1 = vcmp.eq.f32.partialorder %v888_v26, 0.0 }
 0x8f2   :  { %v887_v7 = vpop.xlane.xlu0 %886 }
 0x8f3   :  { %v1205_v9 = vpop.eup %1204  ;;  %v889_v10 = vmul.f32 %v887_v7, %v1411_v27 }
 0x8f4   :  { %v891_v11 = vmul.f32 %v1205_v9, %v888_v26 }
 0x8f5   :  { %1206 = vrsqrt.f32 %v889_v10  ;;  %vm909_vm8 = vcmp.eq.f32.partialorder %v889_v10, inf  ;;  %v912_v29 = vand.u32 2147483648, %v889_v10  ;;  %vm911_vm9 = vcmp.eq.f32.partialorder %v889_v10, 0.0 }
 0x8f6   :  { %v892_v12 = vmul.f32 %v1205_v9, %v891_v11  ;;  %v1159_v11 = vld [vmem:[%s1622_s7] ss:$0 sm:$0xff]  ;;  %s1324_s7 = smov 128  }
 0x8f8   :  { %v893_v14 = vmul.f32 0.5, %v892_v12 }
 0x8fa   :  { %v894_v15 = vsub.f32 1.5, %v893_v14 }
 0x8fb   :  { %v1207_v16 = vpop.eup %1206 }
 0x8fc   :  { %v895_v17 = vmul.f32 %v1205_v9, %v894_v15  ;;  %v903_v19 = vmul.f32 %v1207_v16, %v889_v10 }
 0x8fe   :  { %v896_v21 = vmul.f32 %v895_v17, %v888_v26  ;;  %v904_v8 = vmul.f32 %v1207_v16, %v903_v19 }
 0x900   :  { %v898_v23 = vsel %vm897_vm15, %v888_v26, %v896_v21  ;;  %v905_v24 = vmul.f32 0.5, %v904_v8 }
 0x901   :  { %v901_v25 = vsel %vm899_vm1, %v900_v22, %v898_v23 }
 0x902   :  { %v917_v13 = vadd.f32 1e-06, %v901_v25  ;;  %v906_v18 = vsub.f32 1.5, %v905_v24 }
 0x904   :  { %1208 = vrcp.f32 %v917_v13  ;;  %v907_v27 = vmul.f32 %v1207_v16, %v906_v18  ;;  %v930_v20 = vand.u32 2147483648, %v917_v13  ;;  %vm924_vm11 = vweird.f32 %v917_v13 }
 0x905   :  { %v928_v38 = vand.u32 2147483647, %v917_v13 }
 0x906   :  { %v908_v28 = vmul.f32 %v907_v27, %v889_v10  ;;  %v931_v42 = vor.u32 1.1754944e-38, %v930_v20 }
 0x907   :  { %vm929_vm13 = vcmp.eq.f32.partialorder %v928_v38, 8.507059e+37 }
 0x908   :  { %v910_v31 = vsel %vm909_vm8, %v889_v10, %v908_v28 }
 0x909   :  { %v913_v32 = vsel %vm911_vm9, %v912_v29, %v910_v31 }
 0x90a   :  { %v1209_v33 = vpop.eup %1208  ;;  %v918_v34 = vadd.f32 1e-06, %v913_v32 }
 0x90b   :  { %v920_v35 = vmul.f32 %v1209_v33, %v917_v13  ;;  %vm925_vm10 = vweird.f32 %v1209_v33 }
 0x90c   :  { %1210 = vrcp.f32 %v918_v34  ;;  %vm926_vm12 = vmor %vm924_vm11, %vm925_vm10  ;;  %v945_v45 = vand.u32 2147483648, %v918_v34  ;;  %v943_v47 = vand.u32 2147483647, %v918_v34  ;;  %vm939_vm2 = vweird.f32 %v918_v34 }
 0x90d   :  { %v921_v36 = vsub.f32 1.0, %v920_v35 }
 0x90e   :  { %v946_v53 = vor.u32 1.1754944e-38, %v945_v45  ;;  %vm944_vm4 = vcmp.eq.f32.partialorder %v943_v47, 8.507059e+37 }
 0x90f   :  { %v922_v30 = vmul.f32 %v1209_v33, %v921_v36 }
 0x911   :  { %v923_v37 = vadd.f32 %v1209_v33, %v922_v30 }
 0x912   :  { %v1211_v1 = vpop.eup %1210 }
 0x913   :  { %v935_v39 = vmul.f32 %v1211_v1, %v918_v34  ;;  %v927_v43 = vsel %vm926_vm12, %v1209_v33, %v923_v37  ;;  %vm940_vm14 = vweird.f32 %v1211_v1 }
 0x914   :  { %v932_v48 = vsel %vm929_vm13, %v931_v42, %v927_v43  ;;  %vm941_vm3 = vmor %vm939_vm2, %vm940_vm14 }
 0x915   :  { %v936_v40 = vsub.f32 1.0, %v935_v39  ;;  %v933_v55 = vmul.f32 %v932_v48, %v915_v50 }
 0x917   :  { %v937_v46 = vmul.f32 %v1211_v1, %v936_v40  ;;  %v950_v61 = vadd.f32 %v949_v60, %v933_v55 }
 0x919   :  { %v938_v51 = vadd.f32 %v1211_v1, %v937_v46 }
 0x91b   :  { %v942_v56 = vsel %vm941_vm3, %v1211_v1, %v938_v51 }
 0x91c   :  { %v947_v58 = vsel %vm944_vm4, %v946_v53, %v942_v56 }
 0x91d   :  { %v948_v44 = vmul.f32 %v947_v58, %v916_v54 }
 0x91f   :  { %v951_v62 = vadd.f32 %v949_v60, %v948_v44 }
 0x921   :  { %v952_v52 = vpack.c.bf16 %v951_v62, %v950_v61 }
 0x923   :  { %1112 = vmatmul.msk.bf16.vlgmr.msrb.gmra.mxu0 %vm83_vm0, %v952_v52 }
 0x9a0   :  { %v985_v3 = vpop.f32.mrf.mxu0 }
 0x9a1   :  { %v986_v26 = vadd.f32 %v1158_v4, %v985_v3 }
 0x9a3   :  { %v990_v7 = vmax.f32 %v986_v26, 0.0 }
 0x9a8   :  { %v987_v5 = vpop.f32.mrf.mxu0 }
 0x9a9   :  { %v988_v6 = vadd.f32 %v1158_v4, %v987_v5 }
 0x9ab   :  { %v991_v9 = vmax.f32 %v988_v6, 0.0 }
 0x9ad   :  { %v992_v10 = vpack.c.bf16 %v991_v9, %v990_v7 }
 0x9af   :  { %1129 = vmatmul.msk.bf16.vlgmr.msrb.gmra.mxu1 %vm1029_vm5, %v992_v10 }
 0xa2c   :  { %v1042_v12 = vpop.f32.mrf.mxu1 }
 0xa2d   :  { %v1043_v14 = vadd.f32 %v1159_v11, %v1042_v12 }
 0xa2f   :  { %v1047_v15 = vadd.f32 %v1043_v14, %v1558_v49 }
 0xa31   :  { %1049 = vst.msk [vmem:[#allocation9] sm:$0xff] %vm83_vm0, %v1047_v15 }
 0xa34   :  { %v1044_v16 = vpop.f32.mrf.mxu1 }
 0xa35   :  { %v1045_v17 = vadd.f32 %v1159_v11, %v1044_v16 }
 0xa37   :  { %v1048_v19 = vadd.f32 %v1045_v17, %v1567_v57 }
 0xa39   :  { %1050 = vst.msk [vmem:[#allocation9 + $0x8] sm:$0xff] %vm83_vm0, %v1048_v19 }
 0xa3a   :  { %1063 = dma.vmem_to_hbm [thread:$0]  %s1056_s5, 256, %s1058_s18, [#allocation4], %s1324_s7, %s1324_s7, %s1325_s19  }
 0xa3b   :  { %1304 = dma.done.wait [#allocation4], 256  }
 0xa3c   :  { %1305 = vsyncadd [#allocation4], 4294967040 }
 0xa3d   :  { %1068 = vsyncpa [#allocation3], 1 }
 0xa3e   :  { %1069 = vsyncpa [#allocation7], 1 }
 0xa3f   :  { %1070 = vsyncpa [#allocation4], 1 }
 0xa40   :  { %1071 = vsyncpa [#allocation5], 1 }

</bundles_post_ra>
